<compile_context>
chip_gen: v5e
topology: v5e:2x2
jax: 0.10.0
libtpu: 0.0.40
codegen_flags: <defaults>
</compile_context>

<pallas_src>
import jax
import jax.numpy as jnp
import numpy as np
from jax.experimental import pallas as pl
from jax.experimental.pallas import tpu as pltpu

EPS = 1e-5


def _make_kernel(B, C, H, W):
    HW = H * W
    CB = C * B
    TAPS = [(dy, dx) for dy in (-1, 0, 1) for dx in (-1, 0, 1)]

    def kernel(x_ref, m_ref, w1_ref, w2_ref, rc_ref, a_ref, o_ref):
        x = x_ref[...].astype(jnp.float32)                     # (CB, HW) slab
        par = rc_ref[:, 4:5]                                   # (CB,1), 1.0 on b==0 rows

        def conv3x3(h, w_ref):
            """3x3 cross-correlation, stride 1, zero padding 1, bias-free.
            h: (CB, HW) slab -> (CB, HW) slab of conv outputs."""
            acc = jnp.zeros((CB, HW), jnp.float32)
            for t, (dy, dx) in enumerate(TAPS):
                shift = (-(dy * W + dx)) % HW
                tap = h if shift == 0 else pltpu.roll(h, shift=shift, axis=1)
                if not (dy == 0 and dx == 0):
                    tap = tap * m_ref[t:t + 1, :]              # zero-padding boundary mask
                for d in range(C):                             # input-channel offset
                    # rows of `rot` hold channel (o+d)%C under output-channel rows o
                    rot = tap if d == 0 else pltpu.roll(tap, shift=(CB - d * B) % CB, axis=0)
                    wcol = w_ref[:, t * C + d: t * C + d + 1]  # (CB,1) per-sublane weight
                    acc = acc + wcol * rot
            return acc

        def group_mean(col):
            """Per-channel mean from per-row lane sums: combine the B=2 batch rows of
            each channel (partner row is r+1 for b==0, r-1 for b==1)."""
            nxt = pltpu.roll(col, shift=CB - 1, axis=0)        # row r gets col[r+1]
            prv = pltpu.roll(col, shift=1, axis=0)             # row r gets col[r-1]
            partner = jnp.where(par > 0.5, nxt, prv)
            return (col + partner) * (1.0 / (B * HW))

        def batchnorm(v, g_col, b_col):
            s = jnp.sum(v, axis=1, keepdims=True)              # (CB,1)
            s2 = jnp.sum(v * v, axis=1, keepdims=True)         # (CB,1)
            mean = group_mean(s)
            var = group_mean(s2) - mean * mean                 # biased batch variance
            scale = jax.lax.rsqrt(var + EPS) * g_col
            return v * scale + (b_col - mean * scale)          # full-slab pass

        # ---- conv1 -> bn1 -> prelu ----
        y = batchnorm(conv3x3(x, w1_ref), rc_ref[:, 0:1], rc_ref[:, 1:2])
        alpha = a_ref[0]                                       # shared PReLU alpha
        h = jnp.where(y >= 0.0, y, alpha * y)
        # ---- conv2 -> bn2 -> residual ----
        y = batchnorm(conv3x3(h, w2_ref), rc_ref[:, 2:3], rc_ref[:, 3:4])
        o_ref[...] = (y + x).astype(o_ref.dtype)               # one unmasked full-slab store

    return kernel


def residual_block_forward(x, p):
    """x: (B, C, H, W) float32 NCHW. p: dict of parameters (PyTorch layout)."""
    B, C, H, W = x.shape
    HW, CB = H * W, C * B
    assert B == 2, "group_mean pair-combine assumes B == 2"  # TODO(synk): generalize to any B

    # Channel-major slab: row r = c*B + b (host-side layout plumbing, not compute).
    x_slab = jnp.transpose(x.reshape(B, C, HW), (1, 0, 2)).reshape(CB, HW)

    # Boundary-validity masks for the 9 taps (the conv's zero padding), shape (9, HW).
    idx = jnp.arange(HW, dtype=jnp.int32)
    hh, ww = idx // W, idx % W
    masks = jnp.stack([
        ((hh + dy >= 0) & (hh + dy < H) & (ww + dx >= 0) & (ww + dx < W)).astype(jnp.float32)
        for dy in (-1, 0, 1) for dx in (-1, 0, 1)])

    def build_wtab(w):
        # tab[o*B + b, t*C + d] = w[o, (o+d)%C, t//3, t%3]  (independent of b)
        wn = np.asarray(jax.device_get(w))
        tab = np.zeros((CB, 9 * C), np.float32)
        for o in range(C):
            for t in range(9):
                for d in range(C):
                    tab[o * B:(o + 1) * B, t * C + d] = wn[o, (o + d) % C, t // 3, t % 3]
        return jnp.asarray(tab)

    per_row = lambda v: jnp.repeat(v, B)                       # (C,) -> (CB,)
    parity = (jnp.arange(CB) % B == 0).astype(jnp.float32)     # 1.0 on b==0 rows
    rowconst = jnp.stack([per_row(p["g1"]), per_row(p["be1"]),
                          per_row(p["g2"]), per_row(p["be2"]), parity], axis=1)  # (CB, 5)

    vmem = pl.BlockSpec(memory_space=pltpu.MemorySpace.VMEM)
    smem = pl.BlockSpec(memory_space=pltpu.MemorySpace.SMEM)

    # Conv biases b1/b2 are intentionally NOT passed: a constant bias before
    # training-mode BatchNorm cancels exactly when the batch mean is subtracted.
    out_slab = pl.pallas_call(
        _make_kernel(B, C, H, W),
        out_shape=jax.ShapeDtypeStruct((CB, HW), x.dtype),
        in_specs=[vmem, vmem, vmem, vmem, vmem, smem],
        out_specs=vmem,
    )(x_slab, masks, build_wtab(p["w1"]), build_wtab(p["w2"]), rowconst, p["alpha"])

    return jnp.transpose(out_slab.reshape(C, B, HW), (1, 0, 2)).reshape(B, C, H, W)


def reference_forward(x, p):
    """Pure-JAX reference matching the PyTorch module's forward (training mode)."""
    def conv(h, w, b):
        y = jax.lax.conv_general_dilated(
            h, w, window_strides=(1, 1), padding="SAME",
            dimension_numbers=("NCHW", "OIHW", "NCHW"))
        return y + b[None, :, None, None]

    def bn(h, g, be):
        m = jnp.mean(h, axis=(0, 2, 3), keepdims=True)
        v = jnp.mean((h - m) ** 2, axis=(0, 2, 3), keepdims=True)
        return (h - m) / jnp.sqrt(v + EPS) * g[None, :, None, None] + be[None, :, None, None]

    out = conv(x, p["w1"], p["b1"])
    out = bn(out, p["g1"], p["be1"])
    out = jnp.where(out >= 0, out, p["alpha"] * out)
    out = conv(out, p["w2"], p["b2"])
    out = bn(out, p["g2"], p["be2"])
    return out + x


if __name__ == "__main__":
    B, C, H, W = 2, 4, 16, 16
    key = jax.random.PRNGKey(0)
    ks = jax.random.split(key, 9)

    x = jax.random.normal(ks[0], (B, C, H, W), jnp.float32)

    params = {
        # conv weights: (out_channels, in_channels, kH, kW), PyTorch layout
        "w1": 0.2 * jax.random.normal(ks[1], (C, C, 3, 3), jnp.float32),
        "b1": 0.1 * jax.random.normal(ks[2], (C,), jnp.float32),
        "g1": 1.0 + 0.1 * jax.random.normal(ks[3], (C,), jnp.float32),
        "be1": 0.1 * jax.random.normal(ks[4], (C,), jnp.float32),
        "alpha": jnp.array([0.25], jnp.float32),          # nn.PReLU() default init
        "w2": 0.2 * jax.random.normal(ks[5], (C, C, 3, 3), jnp.float32),
        "b2": 0.1 * jax.random.normal(ks[6], (C,), jnp.float32),
        "g2": 1.0 + 0.1 * jax.random.normal(ks[7], (C,), jnp.float32),
        "be2": 0.1 * jax.random.normal(ks[8], (C,), jnp.float32),
    }

    out = residual_block_forward(x, params)
    out = jax.block_until_ready(out)

    ref = reference_forward(x, params)
    assert out.shape == (B, C, H, W)
    if not bool(jnp.allclose(out, ref, atol=1e-4, rtol=1e-4)):
        raise AssertionError("Pallas kernel output mismatches JAX reference")
    print("KERNEL_OK")
</pallas_src>

<mosaic_0001>
module attributes {stable_mosaic.version = 11 : i64} {
  func.func @kernel(%arg0: memref<8x256xf32, #tpu.memory_space<vmem>>, %arg1: memref<9x256xf32, #tpu.memory_space<vmem>>, %arg2: memref<8x36xf32, #tpu.memory_space<vmem>>, %arg3: memref<8x36xf32, #tpu.memory_space<vmem>>, %arg4: memref<8x5xf32, #tpu.memory_space<vmem>>, %arg5: memref<1xf32, #tpu.memory_space<smem>>, %arg6: memref<8x256xf32, #tpu.memory_space<vmem>>) attributes {dimension_semantics = [], scalar_prefetch = 0 : i64, scratch_operands = 0 : i64, tpu.core_type = #tpu.core_type<tc>} {
    %c0 = arith.constant 0 : index
    %c0_0 = arith.constant 0 : index
    %0 = vector.load %arg0[%c0, %c0_0] : memref<8x256xf32, #tpu.memory_space<vmem>>, vector<8x256xf32>
    %c0_1 = arith.constant 0 : index
    %c4 = arith.constant 4 : index
    %1 = vector.load %arg4[%c0_1, %c4] : memref<8x5xf32, #tpu.memory_space<vmem>>, vector<8x1xf32>
    %cst = arith.constant 0.000000e+00 : f32
    %2 = vector.broadcast %cst : f32 to vector<8x256xf32>
    %c17_i32 = arith.constant 17 : i32
    %3 = tpu.dynamic_rotate %0 by %c17_i32 dim 1 : vector<8x256xf32>, i32 -> vector<8x256xf32>
    %c0_2 = arith.constant 0 : index
    %c0_3 = arith.constant 0 : index
    %4 = vector.load %arg1[%c0_2, %c0_3] : memref<9x256xf32, #tpu.memory_space<vmem>>, vector<1x256xf32>
    %5 = vector.broadcast %4 : vector<1x256xf32> to vector<8x256xf32>
    %6 = arith.mulf %3, %5 : vector<8x256xf32>
    %c0_4 = arith.constant 0 : index
    %c0_5 = arith.constant 0 : index
    %7 = vector.load %arg2[%c0_4, %c0_5] : memref<8x36xf32, #tpu.memory_space<vmem>>, vector<8x1xf32>
    %8 = vector.broadcast %7 : vector<8x1xf32> to vector<8x256xf32>
    %9 = arith.mulf %8, %6 : vector<8x256xf32>
    %10 = arith.addf %2, %9 : vector<8x256xf32>
    %c6_i32 = arith.constant 6 : i32
    %11 = tpu.dynamic_rotate %6 by %c6_i32 dim 0 : vector<8x256xf32>, i32 -> vector<8x256xf32>
    %c0_6 = arith.constant 0 : index
    %c1 = arith.constant 1 : index
    %12 = vector.load %arg2[%c0_6, %c1] : memref<8x36xf32, #tpu.memory_space<vmem>>, vector<8x1xf32>
    %13 = vector.broadcast %12 : vector<8x1xf32> to vector<8x256xf32>
    %14 = arith.mulf %13, %11 : vector<8x256xf32>
    %15 = arith.addf %10, %14 : vector<8x256xf32>
    %c4_i32 = arith.constant 4 : i32
    %16 = tpu.dynamic_rotate %6 by %c4_i32 dim 0 : vector<8x256xf32>, i32 -> vector<8x256xf32>
    %c0_7 = arith.constant 0 : index
    %c2 = arith.constant 2 : index
    %17 = vector.load %arg2[%c0_7, %c2] : memref<8x36xf32, #tpu.memory_space<vmem>>, vector<8x1xf32>
    %18 = vector.broadcast %17 : vector<8x1xf32> to vector<8x256xf32>
    %19 = arith.mulf %18, %16 : vector<8x256xf32>
    %20 = arith.addf %15, %19 : vector<8x256xf32>
    %c2_i32 = arith.constant 2 : i32
    %21 = tpu.dynamic_rotate %6 by %c2_i32 dim 0 : vector<8x256xf32>, i32 -> vector<8x256xf32>
    %c0_8 = arith.constant 0 : index
    %c3 = arith.constant 3 : index
    %22 = vector.load %arg2[%c0_8, %c3] : memref<8x36xf32, #tpu.memory_space<vmem>>, vector<8x1xf32>
    %23 = vector.broadcast %22 : vector<8x1xf32> to vector<8x256xf32>
    %24 = arith.mulf %23, %21 : vector<8x256xf32>
    %25 = arith.addf %20, %24 : vector<8x256xf32>
    %c16_i32 = arith.constant 16 : i32
    %26 = tpu.dynamic_rotate %0 by %c16_i32 dim 1 : vector<8x256xf32>, i32 -> vector<8x256xf32>
    %c1_9 = arith.constant 1 : index
    %c0_10 = arith.constant 0 : index
    %27 = vector.load %arg1[%c1_9, %c0_10] : memref<9x256xf32, #tpu.memory_space<vmem>>, vector<1x256xf32>
    %28 = vector.broadcast %27 : vector<1x256xf32> to vector<8x256xf32>
    %29 = arith.mulf %26, %28 : vector<8x256xf32>
    %c0_11 = arith.constant 0 : index
    %c4_12 = arith.constant 4 : index
    %30 = vector.load %arg2[%c0_11, %c4_12] : memref<8x36xf32, #tpu.memory_space<vmem>>, vector<8x1xf32>
    %31 = vector.broadcast %30 : vector<8x1xf32> to vector<8x256xf32>
    %32 = arith.mulf %31, %29 : vector<8x256xf32>
    %33 = arith.addf %25, %32 : vector<8x256xf32>
    %c6_i32_13 = arith.constant 6 : i32
    %34 = tpu.dynamic_rotate %29 by %c6_i32_13 dim 0 : vector<8x256xf32>, i32 -> vector<8x256xf32>
    %c0_14 = arith.constant 0 : index
    %c5 = arith.constant 5 : index
    %35 = vector.load %arg2[%c0_14, %c5] : memref<8x36xf32, #tpu.memory_space<vmem>>, vector<8x1xf32>
    %36 = vector.broadcast %35 : vector<8x1xf32> to vector<8x256xf32>
    %37 = arith.mulf %36, %34 : vector<8x256xf32>
    %38 = arith.addf %33, %37 : vector<8x256xf32>
    %c4_i32_15 = arith.constant 4 : i32
    %39 = tpu.dynamic_rotate %29 by %c4_i32_15 dim 0 : vector<8x256xf32>, i32 -> vector<8x256xf32>
    %c0_16 = arith.constant 0 : index
    %c6 = arith.constant 6 : index
    %40 = vector.load %arg2[%c0_16, %c6] : memref<8x36xf32, #tpu.memory_space<vmem>>, vector<8x1xf32>
    %41 = vector.broadcast %40 : vector<8x1xf32> to vector<8x256xf32>
    %42 = arith.mulf %41, %39 : vector<8x256xf32>
    %43 = arith.addf %38, %42 : vector<8x256xf32>
    %c2_i32_17 = arith.constant 2 : i32
    %44 = tpu.dynamic_rotate %29 by %c2_i32_17 dim 0 : vector<8x256xf32>, i32 -> vector<8x256xf32>
    %c0_18 = arith.constant 0 : index
    %c7 = arith.constant 7 : index
    %45 = vector.load %arg2[%c0_18, %c7] : memref<8x36xf32, #tpu.memory_space<vmem>>, vector<8x1xf32>
    %46 = vector.broadcast %45 : vector<8x1xf32> to vector<8x256xf32>
    %47 = arith.mulf %46, %44 : vector<8x256xf32>
    %48 = arith.addf %43, %47 : vector<8x256xf32>
    %c15_i32 = arith.constant 15 : i32
    %49 = tpu.dynamic_rotate %0 by %c15_i32 dim 1 : vector<8x256xf32>, i32 -> vector<8x256xf32>
    %c2_19 = arith.constant 2 : index
    %c0_20 = arith.constant 0 : index
    %50 = vector.load %arg1[%c2_19, %c0_20] : memref<9x256xf32, #tpu.memory_space<vmem>>, vector<1x256xf32>
    %51 = vector.broadcast %50 : vector<1x256xf32> to vector<8x256xf32>
    %52 = arith.mulf %49, %51 : vector<8x256xf32>
    %c0_21 = arith.constant 0 : index
    %c8 = arith.constant 8 : index
    %53 = vector.load %arg2[%c0_21, %c8] : memref<8x36xf32, #tpu.memory_space<vmem>>, vector<8x1xf32>
    %54 = vector.broadcast %53 : vector<8x1xf32> to vector<8x256xf32>
    %55 = arith.mulf %54, %52 : vector<8x256xf32>
    %56 = arith.addf %48, %55 : vector<8x256xf32>
    %c6_i32_22 = arith.constant 6 : i32
    %57 = tpu.dynamic_rotate %52 by %c6_i32_22 dim 0 : vector<8x256xf32>, i32 -> vector<8x256xf32>
    %c0_23 = arith.constant 0 : index
    %c9 = arith.constant 9 : index
    %58 = vector.load %arg2[%c0_23, %c9] : memref<8x36xf32, #tpu.memory_space<vmem>>, vector<8x1xf32>
    %59 = vector.broadcast %58 : vector<8x1xf32> to vector<8x256xf32>
    %60 = arith.mulf %59, %57 : vector<8x256xf32>
    %61 = arith.addf %56, %60 : vector<8x256xf32>
    %c4_i32_24 = arith.constant 4 : i32
    %62 = tpu.dynamic_rotate %52 by %c4_i32_24 dim 0 : vector<8x256xf32>, i32 -> vector<8x256xf32>
    %c0_25 = arith.constant 0 : index
    %c10 = arith.constant 10 : index
    %63 = vector.load %arg2[%c0_25, %c10] : memref<8x36xf32, #tpu.memory_space<vmem>>, vector<8x1xf32>
    %64 = vector.broadcast %63 : vector<8x1xf32> to vector<8x256xf32>
    %65 = arith.mulf %64, %62 : vector<8x256xf32>
    %66 = arith.addf %61, %65 : vector<8x256xf32>
    %c2_i32_26 = arith.constant 2 : i32
    %67 = tpu.dynamic_rotate %52 by %c2_i32_26 dim 0 : vector<8x256xf32>, i32 -> vector<8x256xf32>
    %c0_27 = arith.constant 0 : index
    %c11 = arith.constant 11 : index
    %68 = vector.load %arg2[%c0_27, %c11] : memref<8x36xf32, #tpu.memory_space<vmem>>, vector<8x1xf32>
    %69 = vector.broadcast %68 : vector<8x1xf32> to vector<8x256xf32>
    %70 = arith.mulf %69, %67 : vector<8x256xf32>
    %71 = arith.addf %66, %70 : vector<8x256xf32>
    %c1_i32 = arith.constant 1 : i32
    %72 = tpu.dynamic_rotate %0 by %c1_i32 dim 1 : vector<8x256xf32>, i32 -> vector<8x256xf32>
    %c3_28 = arith.constant 3 : index
    %c0_29 = arith.constant 0 : index
    %73 = vector.load %arg1[%c3_28, %c0_29] : memref<9x256xf32, #tpu.memory_space<vmem>>, vector<1x256xf32>
    %74 = vector.broadcast %73 : vector<1x256xf32> to vector<8x256xf32>
    %75 = arith.mulf %72, %74 : vector<8x256xf32>
    %c0_30 = arith.constant 0 : index
    %c12 = arith.constant 12 : index
    %76 = vector.load %arg2[%c0_30, %c12] : memref<8x36xf32, #tpu.memory_space<vmem>>, vector<8x1xf32>
    %77 = vector.broadcast %76 : vector<8x1xf32> to vector<8x256xf32>
    %78 = arith.mulf %77, %75 : vector<8x256xf32>
    %79 = arith.addf %71, %78 : vector<8x256xf32>
    %c6_i32_31 = arith.constant 6 : i32
    %80 = tpu.dynamic_rotate %75 by %c6_i32_31 dim 0 : vector<8x256xf32>, i32 -> vector<8x256xf32>
    %c0_32 = arith.constant 0 : index
    %c13 = arith.constant 13 : index
    %81 = vector.load %arg2[%c0_32, %c13] : memref<8x36xf32, #tpu.memory_space<vmem>>, vector<8x1xf32>
    %82 = vector.broadcast %81 : vector<8x1xf32> to vector<8x256xf32>
    %83 = arith.mulf %82, %80 : vector<8x256xf32>
    %84 = arith.addf %79, %83 : vector<8x256xf32>
    %c4_i32_33 = arith.constant 4 : i32
    %85 = tpu.dynamic_rotate %75 by %c4_i32_33 dim 0 : vector<8x256xf32>, i32 -> vector<8x256xf32>
    %c0_34 = arith.constant 0 : index
    %c14 = arith.constant 14 : index
    %86 = vector.load %arg2[%c0_34, %c14] : memref<8x36xf32, #tpu.memory_space<vmem>>, vector<8x1xf32>
    %87 = vector.broadcast %86 : vector<8x1xf32> to vector<8x256xf32>
    %88 = arith.mulf %87, %85 : vector<8x256xf32>
    %89 = arith.addf %84, %88 : vector<8x256xf32>
    %c2_i32_35 = arith.constant 2 : i32
    %90 = tpu.dynamic_rotate %75 by %c2_i32_35 dim 0 : vector<8x256xf32>, i32 -> vector<8x256xf32>
    %c0_36 = arith.constant 0 : index
    %c15 = arith.constant 15 : index
    %91 = vector.load %arg2[%c0_36, %c15] : memref<8x36xf32, #tpu.memory_space<vmem>>, vector<8x1xf32>
    %92 = vector.broadcast %91 : vector<8x1xf32> to vector<8x256xf32>
    %93 = arith.mulf %92, %90 : vector<8x256xf32>
    %94 = arith.addf %89, %93 : vector<8x256xf32>
    %c0_37 = arith.constant 0 : index
    %c16 = arith.constant 16 : index
    %95 = vector.load %arg2[%c0_37, %c16] : memref<8x36xf32, #tpu.memory_space<vmem>>, vector<8x1xf32>
    %96 = vector.broadcast %95 : vector<8x1xf32> to vector<8x256xf32>
    %97 = arith.mulf %96, %0 : vector<8x256xf32>
    %98 = arith.addf %94, %97 : vector<8x256xf32>
    %c6_i32_38 = arith.constant 6 : i32
    %99 = tpu.dynamic_rotate %0 by %c6_i32_38 dim 0 : vector<8x256xf32>, i32 -> vector<8x256xf32>
    %c0_39 = arith.constant 0 : index
    %c17 = arith.constant 17 : index
    %100 = vector.load %arg2[%c0_39, %c17] : memref<8x36xf32, #tpu.memory_space<vmem>>, vector<8x1xf32>
    %101 = vector.broadcast %100 : vector<8x1xf32> to vector<8x256xf32>
    %102 = arith.mulf %101, %99 : vector<8x256xf32>
    %103 = arith.addf %98, %102 : vector<8x256xf32>
    %c4_i32_40 = arith.constant 4 : i32
    %104 = tpu.dynamic_rotate %0 by %c4_i32_40 dim 0 : vector<8x256xf32>, i32 -> vector<8x256xf32>
    %c0_41 = arith.constant 0 : index
    %c18 = arith.constant 18 : index
    %105 = vector.load %arg2[%c0_41, %c18] : memref<8x36xf32, #tpu.memory_space<vmem>>, vector<8x1xf32>
    %106 = vector.broadcast %105 : vector<8x1xf32> to vector<8x256xf32>
    %107 = arith.mulf %106, %104 : vector<8x256xf32>
    %108 = arith.addf %103, %107 : vector<8x256xf32>
    %c2_i32_42 = arith.constant 2 : i32
    %109 = tpu.dynamic_rotate %0 by %c2_i32_42 dim 0 : vector<8x256xf32>, i32 -> vector<8x256xf32>
    %c0_43 = arith.constant 0 : index
    %c19 = arith.constant 19 : index
    %110 = vector.load %arg2[%c0_43, %c19] : memref<8x36xf32, #tpu.memory_space<vmem>>, vector<8x1xf32>
    %111 = vector.broadcast %110 : vector<8x1xf32> to vector<8x256xf32>
    %112 = arith.mulf %111, %109 : vector<8x256xf32>
    %113 = arith.addf %108, %112 : vector<8x256xf32>
    %c255_i32 = arith.constant 255 : i32
    %114 = tpu.dynamic_rotate %0 by %c255_i32 dim 1 : vector<8x256xf32>, i32 -> vector<8x256xf32>
    %c5_44 = arith.constant 5 : index
    %c0_45 = arith.constant 0 : index
    %115 = vector.load %arg1[%c5_44, %c0_45] : memref<9x256xf32, #tpu.memory_space<vmem>>, vector<1x256xf32>
    %116 = vector.broadcast %115 : vector<1x256xf32> to vector<8x256xf32>
    %117 = arith.mulf %114, %116 : vector<8x256xf32>
    %c0_46 = arith.constant 0 : index
    %c20 = arith.constant 20 : index
    %118 = vector.load %arg2[%c0_46, %c20] : memref<8x36xf32, #tpu.memory_space<vmem>>, vector<8x1xf32>
    %119 = vector.broadcast %118 : vector<8x1xf32> to vector<8x256xf32>
    %120 = arith.mulf %119, %117 : vector<8x256xf32>
    %121 = arith.addf %113, %120 : vector<8x256xf32>
    %c6_i32_47 = arith.constant 6 : i32
    %122 = tpu.dynamic_rotate %117 by %c6_i32_47 dim 0 : vector<8x256xf32>, i32 -> vector<8x256xf32>
    %c0_48 = arith.constant 0 : index
    %c21 = arith.constant 21 : index
    %123 = vector.load %arg2[%c0_48, %c21] : memref<8x36xf32, #tpu.memory_space<vmem>>, vector<8x1xf32>
    %124 = vector.broadcast %123 : vector<8x1xf32> to vector<8x256xf32>
    %125 = arith.mulf %124, %122 : vector<8x256xf32>
    %126 = arith.addf %121, %125 : vector<8x256xf32>
    %c4_i32_49 = arith.constant 4 : i32
    %127 = tpu.dynamic_rotate %117 by %c4_i32_49 dim 0 : vector<8x256xf32>, i32 -> vector<8x256xf32>
    %c0_50 = arith.constant 0 : index
    %c22 = arith.constant 22 : index
    %128 = vector.load %arg2[%c0_50, %c22] : memref<8x36xf32, #tpu.memory_space<vmem>>, vector<8x1xf32>
    %129 = vector.broadcast %128 : vector<8x1xf32> to vector<8x256xf32>
    %130 = arith.mulf %129, %127 : vector<8x256xf32>
    %131 = arith.addf %126, %130 : vector<8x256xf32>
    %c2_i32_51 = arith.constant 2 : i32
    %132 = tpu.dynamic_rotate %117 by %c2_i32_51 dim 0 : vector<8x256xf32>, i32 -> vector<8x256xf32>
    %c0_52 = arith.constant 0 : index
    %c23 = arith.constant 23 : index
    %133 = vector.load %arg2[%c0_52, %c23] : memref<8x36xf32, #tpu.memory_space<vmem>>, vector<8x1xf32>
    %134 = vector.broadcast %133 : vector<8x1xf32> to vector<8x256xf32>
    %135 = arith.mulf %134, %132 : vector<8x256xf32>
    %136 = arith.addf %131, %135 : vector<8x256xf32>
    %c241_i32 = arith.constant 241 : i32
    %137 = tpu.dynamic_rotate %0 by %c241_i32 dim 1 : vector<8x256xf32>, i32 -> vector<8x256xf32>
    %c6_53 = arith.constant 6 : index
    %c0_54 = arith.constant 0 : index
    %138 = vector.load %arg1[%c6_53, %c0_54] : memref<9x256xf32, #tpu.memory_space<vmem>>, vector<1x256xf32>
    %139 = vector.broadcast %138 : vector<1x256xf32> to vector<8x256xf32>
    %140 = arith.mulf %137, %139 : vector<8x256xf32>
    %c0_55 = arith.constant 0 : index
    %c24 = arith.constant 24 : index
    %141 = vector.load %arg2[%c0_55, %c24] : memref<8x36xf32, #tpu.memory_space<vmem>>, vector<8x1xf32>
    %142 = vector.broadcast %141 : vector<8x1xf32> to vector<8x256xf32>
    %143 = arith.mulf %142, %140 : vector<8x256xf32>
    %144 = arith.addf %136, %143 : vector<8x256xf32>
    %c6_i32_56 = arith.constant 6 : i32
    %145 = tpu.dynamic_rotate %140 by %c6_i32_56 dim 0 : vector<8x256xf32>, i32 -> vector<8x256xf32>
    %c0_57 = arith.constant 0 : index
    %c25 = arith.constant 25 : index
    %146 = vector.load %arg2[%c0_57, %c25] : memref<8x36xf32, #tpu.memory_space<vmem>>, vector<8x1xf32>
    %147 = vector.broadcast %146 : vector<8x1xf32> to vector<8x256xf32>
    %148 = arith.mulf %147, %145 : vector<8x256xf32>
    %149 = arith.addf %144, %148 : vector<8x256xf32>
    %c4_i32_58 = arith.constant 4 : i32
    %150 = tpu.dynamic_rotate %140 by %c4_i32_58 dim 0 : vector<8x256xf32>, i32 -> vector<8x256xf32>
    %c0_59 = arith.constant 0 : index
    %c26 = arith.constant 26 : index
    %151 = vector.load %arg2[%c0_59, %c26] : memref<8x36xf32, #tpu.memory_space<vmem>>, vector<8x1xf32>
    %152 = vector.broadcast %151 : vector<8x1xf32> to vector<8x256xf32>
    %153 = arith.mulf %152, %150 : vector<8x256xf32>
    %154 = arith.addf %149, %153 : vector<8x256xf32>
    %c2_i32_60 = arith.constant 2 : i32
    %155 = tpu.dynamic_rotate %140 by %c2_i32_60 dim 0 : vector<8x256xf32>, i32 -> vector<8x256xf32>
    %c0_61 = arith.constant 0 : index
    %c27 = arith.constant 27 : index
    %156 = vector.load %arg2[%c0_61, %c27] : memref<8x36xf32, #tpu.memory_space<vmem>>, vector<8x1xf32>
    %157 = vector.broadcast %156 : vector<8x1xf32> to vector<8x256xf32>
    %158 = arith.mulf %157, %155 : vector<8x256xf32>
    %159 = arith.addf %154, %158 : vector<8x256xf32>
    %c240_i32 = arith.constant 240 : i32
    %160 = tpu.dynamic_rotate %0 by %c240_i32 dim 1 : vector<8x256xf32>, i32 -> vector<8x256xf32>
    %c7_62 = arith.constant 7 : index
    %c0_63 = arith.constant 0 : index
    %161 = vector.load %arg1[%c7_62, %c0_63] : memref<9x256xf32, #tpu.memory_space<vmem>>, vector<1x256xf32>
    %162 = vector.broadcast %161 : vector<1x256xf32> to vector<8x256xf32>
    %163 = arith.mulf %160, %162 : vector<8x256xf32>
    %c0_64 = arith.constant 0 : index
    %c28 = arith.constant 28 : index
    %164 = vector.load %arg2[%c0_64, %c28] : memref<8x36xf32, #tpu.memory_space<vmem>>, vector<8x1xf32>
    %165 = vector.broadcast %164 : vector<8x1xf32> to vector<8x256xf32>
    %166 = arith.mulf %165, %163 : vector<8x256xf32>
    %167 = arith.addf %159, %166 : vector<8x256xf32>
    %c6_i32_65 = arith.constant 6 : i32
    %168 = tpu.dynamic_rotate %163 by %c6_i32_65 dim 0 : vector<8x256xf32>, i32 -> vector<8x256xf32>
    %c0_66 = arith.constant 0 : index
    %c29 = arith.constant 29 : index
    %169 = vector.load %arg2[%c0_66, %c29] : memref<8x36xf32, #tpu.memory_space<vmem>>, vector<8x1xf32>
    %170 = vector.broadcast %169 : vector<8x1xf32> to vector<8x256xf32>
    %171 = arith.mulf %170, %168 : vector<8x256xf32>
    %172 = arith.addf %167, %171 : vector<8x256xf32>
    %c4_i32_67 = arith.constant 4 : i32
    %173 = tpu.dynamic_rotate %163 by %c4_i32_67 dim 0 : vector<8x256xf32>, i32 -> vector<8x256xf32>
    %c0_68 = arith.constant 0 : index
    %c30 = arith.constant 30 : index
    %174 = vector.load %arg2[%c0_68, %c30] : memref<8x36xf32, #tpu.memory_space<vmem>>, vector<8x1xf32>
    %175 = vector.broadcast %174 : vector<8x1xf32> to vector<8x256xf32>
    %176 = arith.mulf %175, %173 : vector<8x256xf32>
    %177 = arith.addf %172, %176 : vector<8x256xf32>
    %c2_i32_69 = arith.constant 2 : i32
    %178 = tpu.dynamic_rotate %163 by %c2_i32_69 dim 0 : vector<8x256xf32>, i32 -> vector<8x256xf32>
    %c0_70 = arith.constant 0 : index
    %c31 = arith.constant 31 : index
    %179 = vector.load %arg2[%c0_70, %c31] : memref<8x36xf32, #tpu.memory_space<vmem>>, vector<8x1xf32>
    %180 = vector.broadcast %179 : vector<8x1xf32> to vector<8x256xf32>
    %181 = arith.mulf %180, %178 : vector<8x256xf32>
    %182 = arith.addf %177, %181 : vector<8x256xf32>
    %c239_i32 = arith.constant 239 : i32
    %183 = tpu.dynamic_rotate %0 by %c239_i32 dim 1 : vector<8x256xf32>, i32 -> vector<8x256xf32>
    %c8_71 = arith.constant 8 : index
    %c0_72 = arith.constant 0 : index
    %184 = vector.load %arg1[%c8_71, %c0_72] : memref<9x256xf32, #tpu.memory_space<vmem>>, vector<1x256xf32>
    %185 = vector.broadcast %184 : vector<1x256xf32> to vector<8x256xf32>
    %186 = arith.mulf %183, %185 : vector<8x256xf32>
    %c0_73 = arith.constant 0 : index
    %c32 = arith.constant 32 : index
    %187 = vector.load %arg2[%c0_73, %c32] : memref<8x36xf32, #tpu.memory_space<vmem>>, vector<8x1xf32>
    %188 = vector.broadcast %187 : vector<8x1xf32> to vector<8x256xf32>
    %189 = arith.mulf %188, %186 : vector<8x256xf32>
    %190 = arith.addf %182, %189 : vector<8x256xf32>
    %c6_i32_74 = arith.constant 6 : i32
    %191 = tpu.dynamic_rotate %186 by %c6_i32_74 dim 0 : vector<8x256xf32>, i32 -> vector<8x256xf32>
    %c0_75 = arith.constant 0 : index
    %c33 = arith.constant 33 : index
    %192 = vector.load %arg2[%c0_75, %c33] : memref<8x36xf32, #tpu.memory_space<vmem>>, vector<8x1xf32>
    %193 = vector.broadcast %192 : vector<8x1xf32> to vector<8x256xf32>
    %194 = arith.mulf %193, %191 : vector<8x256xf32>
    %195 = arith.addf %190, %194 : vector<8x256xf32>
    %c4_i32_76 = arith.constant 4 : i32
    %196 = tpu.dynamic_rotate %186 by %c4_i32_76 dim 0 : vector<8x256xf32>, i32 -> vector<8x256xf32>
    %c0_77 = arith.constant 0 : index
    %c34 = arith.constant 34 : index
    %197 = vector.load %arg2[%c0_77, %c34] : memref<8x36xf32, #tpu.memory_space<vmem>>, vector<8x1xf32>
    %198 = vector.broadcast %197 : vector<8x1xf32> to vector<8x256xf32>
    %199 = arith.mulf %198, %196 : vector<8x256xf32>
    %200 = arith.addf %195, %199 : vector<8x256xf32>
    %c2_i32_78 = arith.constant 2 : i32
    %201 = tpu.dynamic_rotate %186 by %c2_i32_78 dim 0 : vector<8x256xf32>, i32 -> vector<8x256xf32>
    %c0_79 = arith.constant 0 : index
    %c35 = arith.constant 35 : index
    %202 = vector.load %arg2[%c0_79, %c35] : memref<8x36xf32, #tpu.memory_space<vmem>>, vector<8x1xf32>
    %203 = vector.broadcast %202 : vector<8x1xf32> to vector<8x256xf32>
    %204 = arith.mulf %203, %201 : vector<8x256xf32>
    %205 = arith.addf %200, %204 : vector<8x256xf32>
    %c0_80 = arith.constant 0 : index
    %c0_81 = arith.constant 0 : index
    %206 = vector.load %arg4[%c0_80, %c0_81] : memref<8x5xf32, #tpu.memory_space<vmem>>, vector<8x1xf32>
    %c0_82 = arith.constant 0 : index
    %c1_83 = arith.constant 1 : index
    %207 = vector.load %arg4[%c0_82, %c1_83] : memref<8x5xf32, #tpu.memory_space<vmem>>, vector<8x1xf32>
    %cst_84 = arith.constant dense<0.000000e+00> : vector<8xf32>
    %208 = vector.multi_reduction <add>, %205, %cst_84 [1] : vector<8x256xf32> to vector<8xf32>
    %209 = vector.shape_cast %208 : vector<8xf32> to vector<8x1xf32>
    %210 = arith.mulf %205, %205 : vector<8x256xf32>
    %cst_85 = arith.constant dense<0.000000e+00> : vector<8xf32>
    %211 = vector.multi_reduction <add>, %210, %cst_85 [1] : vector<8x256xf32> to vector<8xf32>
    %212 = vector.shape_cast %211 : vector<8xf32> to vector<8x1xf32>
    %c7_i32 = arith.constant 7 : i32
    %213 = tpu.dynamic_rotate %209 by %c7_i32 dim 0 : vector<8x1xf32>, i32 -> vector<8x1xf32>
    %c1_i32_86 = arith.constant 1 : i32
    %214 = tpu.dynamic_rotate %209 by %c1_i32_86 dim 0 : vector<8x1xf32>, i32 -> vector<8x1xf32>
    %cst_87 = arith.constant 5.000000e-01 : f32
    %215 = vector.broadcast %cst_87 : f32 to vector<8x1xf32>
    %216 = arith.cmpf ogt, %1, %215 : vector<8x1xf32>
    %217 = arith.select %216, %213, %214 : vector<8x1xi1>, vector<8x1xf32>
    %218 = arith.addf %209, %217 : vector<8x1xf32>
    %cst_88 = arith.constant 0.001953125 : f32
    %219 = vector.broadcast %cst_88 : f32 to vector<8x1xf32>
    %220 = arith.mulf %218, %219 : vector<8x1xf32>
    %c7_i32_89 = arith.constant 7 : i32
    %221 = tpu.dynamic_rotate %212 by %c7_i32_89 dim 0 : vector<8x1xf32>, i32 -> vector<8x1xf32>
    %c1_i32_90 = arith.constant 1 : i32
    %222 = tpu.dynamic_rotate %212 by %c1_i32_90 dim 0 : vector<8x1xf32>, i32 -> vector<8x1xf32>
    %cst_91 = arith.constant 5.000000e-01 : f32
    %223 = vector.broadcast %cst_91 : f32 to vector<8x1xf32>
    %224 = arith.cmpf ogt, %1, %223 : vector<8x1xf32>
    %225 = arith.select %224, %221, %222 : vector<8x1xi1>, vector<8x1xf32>
    %226 = arith.addf %212, %225 : vector<8x1xf32>
    %cst_92 = arith.constant 0.001953125 : f32
    %227 = vector.broadcast %cst_92 : f32 to vector<8x1xf32>
    %228 = arith.mulf %226, %227 : vector<8x1xf32>
    %229 = arith.mulf %220, %220 : vector<8x1xf32>
    %230 = arith.subf %228, %229 : vector<8x1xf32>
    %cst_93 = arith.constant 9.99999974E-6 : f32
    %231 = vector.broadcast %cst_93 : f32 to vector<8x1xf32>
    %232 = arith.addf %230, %231 : vector<8x1xf32>
    %233 = math.rsqrt %232 : vector<8x1xf32>
    %234 = arith.mulf %233, %206 : vector<8x1xf32>
    %235 = vector.broadcast %234 : vector<8x1xf32> to vector<8x256xf32>
    %236 = arith.mulf %205, %235 : vector<8x256xf32>
    %237 = arith.mulf %220, %234 : vector<8x1xf32>
    %238 = arith.subf %207, %237 : vector<8x1xf32>
    %239 = vector.broadcast %238 : vector<8x1xf32> to vector<8x256xf32>
    %240 = arith.addf %236, %239 : vector<8x256xf32>
    %c0_94 = arith.constant 0 : index
    %241 = memref.load %arg5[%c0_94] : memref<1xf32, #tpu.memory_space<smem>>
    %cst_95 = arith.constant 0.000000e+00 : f32
    %242 = vector.broadcast %cst_95 : f32 to vector<8x256xf32>
    %243 = arith.cmpf oge, %240, %242 : vector<8x256xf32>
    %244 = vector.broadcast %241 : f32 to vector<8x256xf32>
    %245 = arith.mulf %244, %240 : vector<8x256xf32>
    %246 = arith.select %243, %240, %245 : vector<8x256xi1>, vector<8x256xf32>
    %cst_96 = arith.constant 0.000000e+00 : f32
    %247 = vector.broadcast %cst_96 : f32 to vector<8x256xf32>
    %c17_i32_97 = arith.constant 17 : i32
    %248 = tpu.dynamic_rotate %246 by %c17_i32_97 dim 1 : vector<8x256xf32>, i32 -> vector<8x256xf32>
    %c0_98 = arith.constant 0 : index
    %c0_99 = arith.constant 0 : index
    %249 = vector.load %arg1[%c0_98, %c0_99] : memref<9x256xf32, #tpu.memory_space<vmem>>, vector<1x256xf32>
    %250 = vector.broadcast %249 : vector<1x256xf32> to vector<8x256xf32>
    %251 = arith.mulf %248, %250 : vector<8x256xf32>
    %c0_100 = arith.constant 0 : index
    %c0_101 = arith.constant 0 : index
    %252 = vector.load %arg3[%c0_100, %c0_101] : memref<8x36xf32, #tpu.memory_space<vmem>>, vector<8x1xf32>
    %253 = vector.broadcast %252 : vector<8x1xf32> to vector<8x256xf32>
    %254 = arith.mulf %253, %251 : vector<8x256xf32>
    %255 = arith.addf %247, %254 : vector<8x256xf32>
    %c6_i32_102 = arith.constant 6 : i32
    %256 = tpu.dynamic_rotate %251 by %c6_i32_102 dim 0 : vector<8x256xf32>, i32 -> vector<8x256xf32>
    %c0_103 = arith.constant 0 : index
    %c1_104 = arith.constant 1 : index
    %257 = vector.load %arg3[%c0_103, %c1_104] : memref<8x36xf32, #tpu.memory_space<vmem>>, vector<8x1xf32>
    %258 = vector.broadcast %257 : vector<8x1xf32> to vector<8x256xf32>
    %259 = arith.mulf %258, %256 : vector<8x256xf32>
    %260 = arith.addf %255, %259 : vector<8x256xf32>
    %c4_i32_105 = arith.constant 4 : i32
    %261 = tpu.dynamic_rotate %251 by %c4_i32_105 dim 0 : vector<8x256xf32>, i32 -> vector<8x256xf32>
    %c0_106 = arith.constant 0 : index
    %c2_107 = arith.constant 2 : index
    %262 = vector.load %arg3[%c0_106, %c2_107] : memref<8x36xf32, #tpu.memory_space<vmem>>, vector<8x1xf32>
    %263 = vector.broadcast %262 : vector<8x1xf32> to vector<8x256xf32>
    %264 = arith.mulf %263, %261 : vector<8x256xf32>
    %265 = arith.addf %260, %264 : vector<8x256xf32>
    %c2_i32_108 = arith.constant 2 : i32
    %266 = tpu.dynamic_rotate %251 by %c2_i32_108 dim 0 : vector<8x256xf32>, i32 -> vector<8x256xf32>
    %c0_109 = arith.constant 0 : index
    %c3_110 = arith.constant 3 : index
    %267 = vector.load %arg3[%c0_109, %c3_110] : memref<8x36xf32, #tpu.memory_space<vmem>>, vector<8x1xf32>
    %268 = vector.broadcast %267 : vector<8x1xf32> to vector<8x256xf32>
    %269 = arith.mulf %268, %266 : vector<8x256xf32>
    %270 = arith.addf %265, %269 : vector<8x256xf32>
    %c16_i32_111 = arith.constant 16 : i32
    %271 = tpu.dynamic_rotate %246 by %c16_i32_111 dim 1 : vector<8x256xf32>, i32 -> vector<8x256xf32>
    %c1_112 = arith.constant 1 : index
    %c0_113 = arith.constant 0 : index
    %272 = vector.load %arg1[%c1_112, %c0_113] : memref<9x256xf32, #tpu.memory_space<vmem>>, vector<1x256xf32>
    %273 = vector.broadcast %272 : vector<1x256xf32> to vector<8x256xf32>
    %274 = arith.mulf %271, %273 : vector<8x256xf32>
    %c0_114 = arith.constant 0 : index
    %c4_115 = arith.constant 4 : index
    %275 = vector.load %arg3[%c0_114, %c4_115] : memref<8x36xf32, #tpu.memory_space<vmem>>, vector<8x1xf32>
    %276 = vector.broadcast %275 : vector<8x1xf32> to vector<8x256xf32>
    %277 = arith.mulf %276, %274 : vector<8x256xf32>
    %278 = arith.addf %270, %277 : vector<8x256xf32>
    %c6_i32_116 = arith.constant 6 : i32
    %279 = tpu.dynamic_rotate %274 by %c6_i32_116 dim 0 : vector<8x256xf32>, i32 -> vector<8x256xf32>
    %c0_117 = arith.constant 0 : index
    %c5_118 = arith.constant 5 : index
    %280 = vector.load %arg3[%c0_117, %c5_118] : memref<8x36xf32, #tpu.memory_space<vmem>>, vector<8x1xf32>
    %281 = vector.broadcast %280 : vector<8x1xf32> to vector<8x256xf32>
    %282 = arith.mulf %281, %279 : vector<8x256xf32>
    %283 = arith.addf %278, %282 : vector<8x256xf32>
    %c4_i32_119 = arith.constant 4 : i32
    %284 = tpu.dynamic_rotate %274 by %c4_i32_119 dim 0 : vector<8x256xf32>, i32 -> vector<8x256xf32>
    %c0_120 = arith.constant 0 : index
    %c6_121 = arith.constant 6 : index
    %285 = vector.load %arg3[%c0_120, %c6_121] : memref<8x36xf32, #tpu.memory_space<vmem>>, vector<8x1xf32>
    %286 = vector.broadcast %285 : vector<8x1xf32> to vector<8x256xf32>
    %287 = arith.mulf %286, %284 : vector<8x256xf32>
    %288 = arith.addf %283, %287 : vector<8x256xf32>
    %c2_i32_122 = arith.constant 2 : i32
    %289 = tpu.dynamic_rotate %274 by %c2_i32_122 dim 0 : vector<8x256xf32>, i32 -> vector<8x256xf32>
    %c0_123 = arith.constant 0 : index
    %c7_124 = arith.constant 7 : index
    %290 = vector.load %arg3[%c0_123, %c7_124] : memref<8x36xf32, #tpu.memory_space<vmem>>, vector<8x1xf32>
    %291 = vector.broadcast %290 : vector<8x1xf32> to vector<8x256xf32>
    %292 = arith.mulf %291, %289 : vector<8x256xf32>
    %293 = arith.addf %288, %292 : vector<8x256xf32>
    %c15_i32_125 = arith.constant 15 : i32
    %294 = tpu.dynamic_rotate %246 by %c15_i32_125 dim 1 : vector<8x256xf32>, i32 -> vector<8x256xf32>
    %c2_126 = arith.constant 2 : index
    %c0_127 = arith.constant 0 : index
    %295 = vector.load %arg1[%c2_126, %c0_127] : memref<9x256xf32, #tpu.memory_space<vmem>>, vector<1x256xf32>
    %296 = vector.broadcast %295 : vector<1x256xf32> to vector<8x256xf32>
    %297 = arith.mulf %294, %296 : vector<8x256xf32>
    %c0_128 = arith.constant 0 : index
    %c8_129 = arith.constant 8 : index
    %298 = vector.load %arg3[%c0_128, %c8_129] : memref<8x36xf32, #tpu.memory_space<vmem>>, vector<8x1xf32>
    %299 = vector.broadcast %298 : vector<8x1xf32> to vector<8x256xf32>
    %300 = arith.mulf %299, %297 : vector<8x256xf32>
    %301 = arith.addf %293, %300 : vector<8x256xf32>
    %c6_i32_130 = arith.constant 6 : i32
    %302 = tpu.dynamic_rotate %297 by %c6_i32_130 dim 0 : vector<8x256xf32>, i32 -> vector<8x256xf32>
    %c0_131 = arith.constant 0 : index
    %c9_132 = arith.constant 9 : index
    %303 = vector.load %arg3[%c0_131, %c9_132] : memref<8x36xf32, #tpu.memory_space<vmem>>, vector<8x1xf32>
    %304 = vector.broadcast %303 : vector<8x1xf32> to vector<8x256xf32>
    %305 = arith.mulf %304, %302 : vector<8x256xf32>
    %306 = arith.addf %301, %305 : vector<8x256xf32>
    %c4_i32_133 = arith.constant 4 : i32
    %307 = tpu.dynamic_rotate %297 by %c4_i32_133 dim 0 : vector<8x256xf32>, i32 -> vector<8x256xf32>
    %c0_134 = arith.constant 0 : index
    %c10_135 = arith.constant 10 : index
    %308 = vector.load %arg3[%c0_134, %c10_135] : memref<8x36xf32, #tpu.memory_space<vmem>>, vector<8x1xf32>
    %309 = vector.broadcast %308 : vector<8x1xf32> to vector<8x256xf32>
    %310 = arith.mulf %309, %307 : vector<8x256xf32>
    %311 = arith.addf %306, %310 : vector<8x256xf32>
    %c2_i32_136 = arith.constant 2 : i32
    %312 = tpu.dynamic_rotate %297 by %c2_i32_136 dim 0 : vector<8x256xf32>, i32 -> vector<8x256xf32>
    %c0_137 = arith.constant 0 : index
    %c11_138 = arith.constant 11 : index
    %313 = vector.load %arg3[%c0_137, %c11_138] : memref<8x36xf32, #tpu.memory_space<vmem>>, vector<8x1xf32>
    %314 = vector.broadcast %313 : vector<8x1xf32> to vector<8x256xf32>
    %315 = arith.mulf %314, %312 : vector<8x256xf32>
    %316 = arith.addf %311, %315 : vector<8x256xf32>
    %c1_i32_139 = arith.constant 1 : i32
    %317 = tpu.dynamic_rotate %246 by %c1_i32_139 dim 1 : vector<8x256xf32>, i32 -> vector<8x256xf32>
    %c3_140 = arith.constant 3 : index
    %c0_141 = arith.constant 0 : index
    %318 = vector.load %arg1[%c3_140, %c0_141] : memref<9x256xf32, #tpu.memory_space<vmem>>, vector<1x256xf32>
    %319 = vector.broadcast %318 : vector<1x256xf32> to vector<8x256xf32>
    %320 = arith.mulf %317, %319 : vector<8x256xf32>
    %c0_142 = arith.constant 0 : index
    %c12_143 = arith.constant 12 : index
    %321 = vector.load %arg3[%c0_142, %c12_143] : memref<8x36xf32, #tpu.memory_space<vmem>>, vector<8x1xf32>
    %322 = vector.broadcast %321 : vector<8x1xf32> to vector<8x256xf32>
    %323 = arith.mulf %322, %320 : vector<8x256xf32>
    %324 = arith.addf %316, %323 : vector<8x256xf32>
    %c6_i32_144 = arith.constant 6 : i32
    %325 = tpu.dynamic_rotate %320 by %c6_i32_144 dim 0 : vector<8x256xf32>, i32 -> vector<8x256xf32>
    %c0_145 = arith.constant 0 : index
    %c13_146 = arith.constant 13 : index
    %326 = vector.load %arg3[%c0_145, %c13_146] : memref<8x36xf32, #tpu.memory_space<vmem>>, vector<8x1xf32>
    %327 = vector.broadcast %326 : vector<8x1xf32> to vector<8x256xf32>
    %328 = arith.mulf %327, %325 : vector<8x256xf32>
    %329 = arith.addf %324, %328 : vector<8x256xf32>
    %c4_i32_147 = arith.constant 4 : i32
    %330 = tpu.dynamic_rotate %320 by %c4_i32_147 dim 0 : vector<8x256xf32>, i32 -> vector<8x256xf32>
    %c0_148 = arith.constant 0 : index
    %c14_149 = arith.constant 14 : index
    %331 = vector.load %arg3[%c0_148, %c14_149] : memref<8x36xf32, #tpu.memory_space<vmem>>, vector<8x1xf32>
    %332 = vector.broadcast %331 : vector<8x1xf32> to vector<8x256xf32>
    %333 = arith.mulf %332, %330 : vector<8x256xf32>
    %334 = arith.addf %329, %333 : vector<8x256xf32>
    %c2_i32_150 = arith.constant 2 : i32
    %335 = tpu.dynamic_rotate %320 by %c2_i32_150 dim 0 : vector<8x256xf32>, i32 -> vector<8x256xf32>
    %c0_151 = arith.constant 0 : index
    %c15_152 = arith.constant 15 : index
    %336 = vector.load %arg3[%c0_151, %c15_152] : memref<8x36xf32, #tpu.memory_space<vmem>>, vector<8x1xf32>
    %337 = vector.broadcast %336 : vector<8x1xf32> to vector<8x256xf32>
    %338 = arith.mulf %337, %335 : vector<8x256xf32>
    %339 = arith.addf %334, %338 : vector<8x256xf32>
    %c0_153 = arith.constant 0 : index
    %c16_154 = arith.constant 16 : index
    %340 = vector.load %arg3[%c0_153, %c16_154] : memref<8x36xf32, #tpu.memory_space<vmem>>, vector<8x1xf32>
    %341 = vector.broadcast %340 : vector<8x1xf32> to vector<8x256xf32>
    %342 = arith.mulf %341, %246 : vector<8x256xf32>
    %343 = arith.addf %339, %342 : vector<8x256xf32>
    %c6_i32_155 = arith.constant 6 : i32
    %344 = tpu.dynamic_rotate %246 by %c6_i32_155 dim 0 : vector<8x256xf32>, i32 -> vector<8x256xf32>
    %c0_156 = arith.constant 0 : index
    %c17_157 = arith.constant 17 : index
    %345 = vector.load %arg3[%c0_156, %c17_157] : memref<8x36xf32, #tpu.memory_space<vmem>>, vector<8x1xf32>
    %346 = vector.broadcast %345 : vector<8x1xf32> to vector<8x256xf32>
    %347 = arith.mulf %346, %344 : vector<8x256xf32>
    %348 = arith.addf %343, %347 : vector<8x256xf32>
    %c4_i32_158 = arith.constant 4 : i32
    %349 = tpu.dynamic_rotate %246 by %c4_i32_158 dim 0 : vector<8x256xf32>, i32 -> vector<8x256xf32>
    %c0_159 = arith.constant 0 : index
    %c18_160 = arith.constant 18 : index
    %350 = vector.load %arg3[%c0_159, %c18_160] : memref<8x36xf32, #tpu.memory_space<vmem>>, vector<8x1xf32>
    %351 = vector.broadcast %350 : vector<8x1xf32> to vector<8x256xf32>
    %352 = arith.mulf %351, %349 : vector<8x256xf32>
    %353 = arith.addf %348, %352 : vector<8x256xf32>
    %c2_i32_161 = arith.constant 2 : i32
    %354 = tpu.dynamic_rotate %246 by %c2_i32_161 dim 0 : vector<8x256xf32>, i32 -> vector<8x256xf32>
    %c0_162 = arith.constant 0 : index
    %c19_163 = arith.constant 19 : index
    %355 = vector.load %arg3[%c0_162, %c19_163] : memref<8x36xf32, #tpu.memory_space<vmem>>, vector<8x1xf32>
    %356 = vector.broadcast %355 : vector<8x1xf32> to vector<8x256xf32>
    %357 = arith.mulf %356, %354 : vector<8x256xf32>
    %358 = arith.addf %353, %357 : vector<8x256xf32>
    %c255_i32_164 = arith.constant 255 : i32
    %359 = tpu.dynamic_rotate %246 by %c255_i32_164 dim 1 : vector<8x256xf32>, i32 -> vector<8x256xf32>
    %c5_165 = arith.constant 5 : index
    %c0_166 = arith.constant 0 : index
    %360 = vector.load %arg1[%c5_165, %c0_166] : memref<9x256xf32, #tpu.memory_space<vmem>>, vector<1x256xf32>
    %361 = vector.broadcast %360 : vector<1x256xf32> to vector<8x256xf32>
    %362 = arith.mulf %359, %361 : vector<8x256xf32>
    %c0_167 = arith.constant 0 : index
    %c20_168 = arith.constant 20 : index
    %363 = vector.load %arg3[%c0_167, %c20_168] : memref<8x36xf32, #tpu.memory_space<vmem>>, vector<8x1xf32>
    %364 = vector.broadcast %363 : vector<8x1xf32> to vector<8x256xf32>
    %365 = arith.mulf %364, %362 : vector<8x256xf32>
    %366 = arith.addf %358, %365 : vector<8x256xf32>
    %c6_i32_169 = arith.constant 6 : i32
    %367 = tpu.dynamic_rotate %362 by %c6_i32_169 dim 0 : vector<8x256xf32>, i32 -> vector<8x256xf32>
    %c0_170 = arith.constant 0 : index
    %c21_171 = arith.constant 21 : index
    %368 = vector.load %arg3[%c0_170, %c21_171] : memref<8x36xf32, #tpu.memory_space<vmem>>, vector<8x1xf32>
    %369 = vector.broadcast %368 : vector<8x1xf32> to vector<8x256xf32>
    %370 = arith.mulf %369, %367 : vector<8x256xf32>
    %371 = arith.addf %366, %370 : vector<8x256xf32>
    %c4_i32_172 = arith.constant 4 : i32
    %372 = tpu.dynamic_rotate %362 by %c4_i32_172 dim 0 : vector<8x256xf32>, i32 -> vector<8x256xf32>
    %c0_173 = arith.constant 0 : index
    %c22_174 = arith.constant 22 : index
    %373 = vector.load %arg3[%c0_173, %c22_174] : memref<8x36xf32, #tpu.memory_space<vmem>>, vector<8x1xf32>
    %374 = vector.broadcast %373 : vector<8x1xf32> to vector<8x256xf32>
    %375 = arith.mulf %374, %372 : vector<8x256xf32>
    %376 = arith.addf %371, %375 : vector<8x256xf32>
    %c2_i32_175 = arith.constant 2 : i32
    %377 = tpu.dynamic_rotate %362 by %c2_i32_175 dim 0 : vector<8x256xf32>, i32 -> vector<8x256xf32>
    %c0_176 = arith.constant 0 : index
    %c23_177 = arith.constant 23 : index
    %378 = vector.load %arg3[%c0_176, %c23_177] : memref<8x36xf32, #tpu.memory_space<vmem>>, vector<8x1xf32>
    %379 = vector.broadcast %378 : vector<8x1xf32> to vector<8x256xf32>
    %380 = arith.mulf %379, %377 : vector<8x256xf32>
    %381 = arith.addf %376, %380 : vector<8x256xf32>
    %c241_i32_178 = arith.constant 241 : i32
    %382 = tpu.dynamic_rotate %246 by %c241_i32_178 dim 1 : vector<8x256xf32>, i32 -> vector<8x256xf32>
    %c6_179 = arith.constant 6 : index
    %c0_180 = arith.constant 0 : index
    %383 = vector.load %arg1[%c6_179, %c0_180] : memref<9x256xf32, #tpu.memory_space<vmem>>, vector<1x256xf32>
    %384 = vector.broadcast %383 : vector<1x256xf32> to vector<8x256xf32>
    %385 = arith.mulf %382, %384 : vector<8x256xf32>
    %c0_181 = arith.constant 0 : index
    %c24_182 = arith.constant 24 : index
    %386 = vector.load %arg3[%c0_181, %c24_182] : memref<8x36xf32, #tpu.memory_space<vmem>>, vector<8x1xf32>
    %387 = vector.broadcast %386 : vector<8x1xf32> to vector<8x256xf32>
    %388 = arith.mulf %387, %385 : vector<8x256xf32>
    %389 = arith.addf %381, %388 : vector<8x256xf32>
    %c6_i32_183 = arith.constant 6 : i32
    %390 = tpu.dynamic_rotate %385 by %c6_i32_183 dim 0 : vector<8x256xf32>, i32 -> vector<8x256xf32>
    %c0_184 = arith.constant 0 : index
    %c25_185 = arith.constant 25 : index
    %391 = vector.load %arg3[%c0_184, %c25_185] : memref<8x36xf32, #tpu.memory_space<vmem>>, vector<8x1xf32>
    %392 = vector.broadcast %391 : vector<8x1xf32> to vector<8x256xf32>
    %393 = arith.mulf %392, %390 : vector<8x256xf32>
    %394 = arith.addf %389, %393 : vector<8x256xf32>
    %c4_i32_186 = arith.constant 4 : i32
    %395 = tpu.dynamic_rotate %385 by %c4_i32_186 dim 0 : vector<8x256xf32>, i32 -> vector<8x256xf32>
    %c0_187 = arith.constant 0 : index
    %c26_188 = arith.constant 26 : index
    %396 = vector.load %arg3[%c0_187, %c26_188] : memref<8x36xf32, #tpu.memory_space<vmem>>, vector<8x1xf32>
    %397 = vector.broadcast %396 : vector<8x1xf32> to vector<8x256xf32>
    %398 = arith.mulf %397, %395 : vector<8x256xf32>
    %399 = arith.addf %394, %398 : vector<8x256xf32>
    %c2_i32_189 = arith.constant 2 : i32
    %400 = tpu.dynamic_rotate %385 by %c2_i32_189 dim 0 : vector<8x256xf32>, i32 -> vector<8x256xf32>
    %c0_190 = arith.constant 0 : index
    %c27_191 = arith.constant 27 : index
    %401 = vector.load %arg3[%c0_190, %c27_191] : memref<8x36xf32, #tpu.memory_space<vmem>>, vector<8x1xf32>
    %402 = vector.broadcast %401 : vector<8x1xf32> to vector<8x256xf32>
    %403 = arith.mulf %402, %400 : vector<8x256xf32>
    %404 = arith.addf %399, %403 : vector<8x256xf32>
    %c240_i32_192 = arith.constant 240 : i32
    %405 = tpu.dynamic_rotate %246 by %c240_i32_192 dim 1 : vector<8x256xf32>, i32 -> vector<8x256xf32>
    %c7_193 = arith.constant 7 : index
    %c0_194 = arith.constant 0 : index
    %406 = vector.load %arg1[%c7_193, %c0_194] : memref<9x256xf32, #tpu.memory_space<vmem>>, vector<1x256xf32>
    %407 = vector.broadcast %406 : vector<1x256xf32> to vector<8x256xf32>
    %408 = arith.mulf %405, %407 : vector<8x256xf32>
    %c0_195 = arith.constant 0 : index
    %c28_196 = arith.constant 28 : index
    %409 = vector.load %arg3[%c0_195, %c28_196] : memref<8x36xf32, #tpu.memory_space<vmem>>, vector<8x1xf32>
    %410 = vector.broadcast %409 : vector<8x1xf32> to vector<8x256xf32>
    %411 = arith.mulf %410, %408 : vector<8x256xf32>
    %412 = arith.addf %404, %411 : vector<8x256xf32>
    %c6_i32_197 = arith.constant 6 : i32
    %413 = tpu.dynamic_rotate %408 by %c6_i32_197 dim 0 : vector<8x256xf32>, i32 -> vector<8x256xf32>
    %c0_198 = arith.constant 0 : index
    %c29_199 = arith.constant 29 : index
    %414 = vector.load %arg3[%c0_198, %c29_199] : memref<8x36xf32, #tpu.memory_space<vmem>>, vector<8x1xf32>
    %415 = vector.broadcast %414 : vector<8x1xf32> to vector<8x256xf32>
    %416 = arith.mulf %415, %413 : vector<8x256xf32>
    %417 = arith.addf %412, %416 : vector<8x256xf32>
    %c4_i32_200 = arith.constant 4 : i32
    %418 = tpu.dynamic_rotate %408 by %c4_i32_200 dim 0 : vector<8x256xf32>, i32 -> vector<8x256xf32>
    %c0_201 = arith.constant 0 : index
    %c30_202 = arith.constant 30 : index
    %419 = vector.load %arg3[%c0_201, %c30_202] : memref<8x36xf32, #tpu.memory_space<vmem>>, vector<8x1xf32>
    %420 = vector.broadcast %419 : vector<8x1xf32> to vector<8x256xf32>
    %421 = arith.mulf %420, %418 : vector<8x256xf32>
    %422 = arith.addf %417, %421 : vector<8x256xf32>
    %c2_i32_203 = arith.constant 2 : i32
    %423 = tpu.dynamic_rotate %408 by %c2_i32_203 dim 0 : vector<8x256xf32>, i32 -> vector<8x256xf32>
    %c0_204 = arith.constant 0 : index
    %c31_205 = arith.constant 31 : index
    %424 = vector.load %arg3[%c0_204, %c31_205] : memref<8x36xf32, #tpu.memory_space<vmem>>, vector<8x1xf32>
    %425 = vector.broadcast %424 : vector<8x1xf32> to vector<8x256xf32>
    %426 = arith.mulf %425, %423 : vector<8x256xf32>
    %427 = arith.addf %422, %426 : vector<8x256xf32>
    %c239_i32_206 = arith.constant 239 : i32
    %428 = tpu.dynamic_rotate %246 by %c239_i32_206 dim 1 : vector<8x256xf32>, i32 -> vector<8x256xf32>
    %c8_207 = arith.constant 8 : index
    %c0_208 = arith.constant 0 : index
    %429 = vector.load %arg1[%c8_207, %c0_208] : memref<9x256xf32, #tpu.memory_space<vmem>>, vector<1x256xf32>
    %430 = vector.broadcast %429 : vector<1x256xf32> to vector<8x256xf32>
    %431 = arith.mulf %428, %430 : vector<8x256xf32>
    %c0_209 = arith.constant 0 : index
    %c32_210 = arith.constant 32 : index
    %432 = vector.load %arg3[%c0_209, %c32_210] : memref<8x36xf32, #tpu.memory_space<vmem>>, vector<8x1xf32>
    %433 = vector.broadcast %432 : vector<8x1xf32> to vector<8x256xf32>
    %434 = arith.mulf %433, %431 : vector<8x256xf32>
    %435 = arith.addf %427, %434 : vector<8x256xf32>
    %c6_i32_211 = arith.constant 6 : i32
    %436 = tpu.dynamic_rotate %431 by %c6_i32_211 dim 0 : vector<8x256xf32>, i32 -> vector<8x256xf32>
    %c0_212 = arith.constant 0 : index
    %c33_213 = arith.constant 33 : index
    %437 = vector.load %arg3[%c0_212, %c33_213] : memref<8x36xf32, #tpu.memory_space<vmem>>, vector<8x1xf32>
    %438 = vector.broadcast %437 : vector<8x1xf32> to vector<8x256xf32>
    %439 = arith.mulf %438, %436 : vector<8x256xf32>
    %440 = arith.addf %435, %439 : vector<8x256xf32>
    %c4_i32_214 = arith.constant 4 : i32
    %441 = tpu.dynamic_rotate %431 by %c4_i32_214 dim 0 : vector<8x256xf32>, i32 -> vector<8x256xf32>
    %c0_215 = arith.constant 0 : index
    %c34_216 = arith.constant 34 : index
    %442 = vector.load %arg3[%c0_215, %c34_216] : memref<8x36xf32, #tpu.memory_space<vmem>>, vector<8x1xf32>
    %443 = vector.broadcast %442 : vector<8x1xf32> to vector<8x256xf32>
    %444 = arith.mulf %443, %441 : vector<8x256xf32>
    %445 = arith.addf %440, %444 : vector<8x256xf32>
    %c2_i32_217 = arith.constant 2 : i32
    %446 = tpu.dynamic_rotate %431 by %c2_i32_217 dim 0 : vector<8x256xf32>, i32 -> vector<8x256xf32>
    %c0_218 = arith.constant 0 : index
    %c35_219 = arith.constant 35 : index
    %447 = vector.load %arg3[%c0_218, %c35_219] : memref<8x36xf32, #tpu.memory_space<vmem>>, vector<8x1xf32>
    %448 = vector.broadcast %447 : vector<8x1xf32> to vector<8x256xf32>
    %449 = arith.mulf %448, %446 : vector<8x256xf32>
    %450 = arith.addf %445, %449 : vector<8x256xf32>
    %c0_220 = arith.constant 0 : index
    %c2_221 = arith.constant 2 : index
    %451 = vector.load %arg4[%c0_220, %c2_221] : memref<8x5xf32, #tpu.memory_space<vmem>>, vector<8x1xf32>
    %c0_222 = arith.constant 0 : index
    %c3_223 = arith.constant 3 : index
    %452 = vector.load %arg4[%c0_222, %c3_223] : memref<8x5xf32, #tpu.memory_space<vmem>>, vector<8x1xf32>
    %cst_224 = arith.constant dense<0.000000e+00> : vector<8xf32>
    %453 = vector.multi_reduction <add>, %450, %cst_224 [1] : vector<8x256xf32> to vector<8xf32>
    %454 = vector.shape_cast %453 : vector<8xf32> to vector<8x1xf32>
    %455 = arith.mulf %450, %450 : vector<8x256xf32>
    %cst_225 = arith.constant dense<0.000000e+00> : vector<8xf32>
    %456 = vector.multi_reduction <add>, %455, %cst_225 [1] : vector<8x256xf32> to vector<8xf32>
    %457 = vector.shape_cast %456 : vector<8xf32> to vector<8x1xf32>
    %c7_i32_226 = arith.constant 7 : i32
    %458 = tpu.dynamic_rotate %454 by %c7_i32_226 dim 0 : vector<8x1xf32>, i32 -> vector<8x1xf32>
    %c1_i32_227 = arith.constant 1 : i32
    %459 = tpu.dynamic_rotate %454 by %c1_i32_227 dim 0 : vector<8x1xf32>, i32 -> vector<8x1xf32>
    %cst_228 = arith.constant 5.000000e-01 : f32
    %460 = vector.broadcast %cst_228 : f32 to vector<8x1xf32>
    %461 = arith.cmpf ogt, %1, %460 : vector<8x1xf32>
    %462 = arith.select %461, %458, %459 : vector<8x1xi1>, vector<8x1xf32>
    %463 = arith.addf %454, %462 : vector<8x1xf32>
    %cst_229 = arith.constant 0.001953125 : f32
    %464 = vector.broadcast %cst_229 : f32 to vector<8x1xf32>
    %465 = arith.mulf %463, %464 : vector<8x1xf32>
    %c7_i32_230 = arith.constant 7 : i32
    %466 = tpu.dynamic_rotate %457 by %c7_i32_230 dim 0 : vector<8x1xf32>, i32 -> vector<8x1xf32>
    %c1_i32_231 = arith.constant 1 : i32
    %467 = tpu.dynamic_rotate %457 by %c1_i32_231 dim 0 : vector<8x1xf32>, i32 -> vector<8x1xf32>
    %cst_232 = arith.constant 5.000000e-01 : f32
    %468 = vector.broadcast %cst_232 : f32 to vector<8x1xf32>
    %469 = arith.cmpf ogt, %1, %468 : vector<8x1xf32>
    %470 = arith.select %469, %466, %467 : vector<8x1xi1>, vector<8x1xf32>
    %471 = arith.addf %457, %470 : vector<8x1xf32>
    %cst_233 = arith.constant 0.001953125 : f32
    %472 = vector.broadcast %cst_233 : f32 to vector<8x1xf32>
    %473 = arith.mulf %471, %472 : vector<8x1xf32>
    %474 = arith.mulf %465, %465 : vector<8x1xf32>
    %475 = arith.subf %473, %474 : vector<8x1xf32>
    %cst_234 = arith.constant 9.99999974E-6 : f32
    %476 = vector.broadcast %cst_234 : f32 to vector<8x1xf32>
    %477 = arith.addf %475, %476 : vector<8x1xf32>
    %478 = math.rsqrt %477 : vector<8x1xf32>
    %479 = arith.mulf %478, %451 : vector<8x1xf32>
    %480 = vector.broadcast %479 : vector<8x1xf32> to vector<8x256xf32>
    %481 = arith.mulf %450, %480 : vector<8x256xf32>
    %482 = arith.mulf %465, %479 : vector<8x1xf32>
    %483 = arith.subf %452, %482 : vector<8x1xf32>
    %484 = vector.broadcast %483 : vector<8x1xf32> to vector<8x256xf32>
    %485 = arith.addf %481, %484 : vector<8x256xf32>
    %486 = arith.addf %485, %0 : vector<8x256xf32>
    %c0_235 = arith.constant 0 : index
    %c0_236 = arith.constant 0 : index
    %487 = vector.load %arg6[%c0_235, %c0_236] : memref<8x256xf32, #tpu.memory_space<vmem>>, vector<8x256xf32>
    tpu.vector_store %arg6[%c0_235, %c0_236], %486 {strides = array<i32>} : memref<8x256xf32, #tpu.memory_space<vmem>>, vector<8x256xf32>,
    return
  }
}

</mosaic_0001>

<bundles_post_ra>
// kernel: tpu_custom_call.1
= control target key start
LH: loop header
LB: loop body
LE: loop exit
PB: predicated region body
PF: predicated region fallthrough
CT: control target
= control target key end

     0   :  { %12 = vsyncpa [#allocation4], 0  ;;  %s2140_s0 = inlined_call_operand.hbm [shape: f32[8,256], index: 0, kind: input, shape index: {}]   ;;  %s2141_s1 = inlined_call_operand.hbm [shape: f32[9,256], index: 1, kind: input, shape index: {}]   ;;  %s2142_s2 = inlined_call_operand.hbm [shape: f32[8,36], index: 2, kind: input, shape index: {}]   ;;  %s2143_s3 = inlined_call_operand.hbm [shape: f32[8,36], index: 3, kind: input, shape index: {}]   ;;  %s2144_s4 = inlined_call_operand.hbm [shape: f32[8,5], index: 4, kind: input, shape index: {}]   ;;  %s2145_s5 = inlined_call_operand.<no memory space> [shape: f32[1], index: 5, kind: input, shape index: {}]   ;;  %s2146_s6 = inlined_call_operand.hbm [shape: f32[8,256], index: 6, kind: output, shape index: {}]  }
   0x1   :  { %13 = vsyncpa [#allocation7], 0 }
   0x2   :  { %14 = vsyncpa [#allocation10], 0  ;;  %s31_s23 = sshll.u32 %s2141_s1, 4  ;;  %s32_s23 = int_to_ptr.hbm [resolvable:$true] %s31_s23 }
   0x3   :  { %15 = vsyncpa [#allocation5], 0  ;;  %s1442_s24 = smov [#allocation6]   ;;  %s56_s28 = sshll.u32 %s2143_s3, 4  ;;  %s57_s28 = int_to_ptr.hbm [resolvable:$true] %s56_s28 }
   0x4   :  { %s33_s25 = sshll.u32 %s1442_s24, 4  ;;  %s1443_s29 = smov 256   ;;  %s34_s25 = int_to_ptr.vmem [resolvable:$true] %s33_s25 }
   0x5   :  { %s1444_s30 = smov 16   ;;  %s1445_s7 = smov [#allocation9]  }
   0x6   :  { %39 = dma.hbm_to_vmem [thread:$0]  %s32_s23, 512, %s34_s25, [#allocation7], %s1443_s29, %s1443_s29, %s1444_s30  }
   0x7   :  { %s58_s8 = sshll.u32 %s1445_s7, 4  ;;  %s21_s1 = sshll.u32 %s2140_s0, 4  ;;  %s59_s8 = int_to_ptr.vmem [resolvable:$true] %s58_s8  ;;  %s22_s1 = int_to_ptr.hbm [resolvable:$true] %s21_s1 }
   0x8   :  { %61 = dma.hbm_to_vmem [thread:$0]  %s57_s28, 128, %s59_s8, [#allocation10]  }
   0x9   :  { %s45_s13 = sshll.u32 %s2142_s2, 4  ;;  %s1446_s14 = smov [#allocation3]   ;;  %s46_s13 = int_to_ptr.hbm [resolvable:$true] %s45_s13 }
   0xa   :  { %s23_s3 = sshll.u32 %s1446_s14, 4  ;;  %s1447_s15 = smov [#allocation8]   ;;  %s24_s3 = int_to_ptr.vmem [resolvable:$true] %s23_s3 }
   0xb   :  { %26 = dma.hbm_to_vmem [thread:$0]  %s22_s1, 256, %s24_s3, [#allocation4]  }
   0xc   :  { %s47_s16 = sshll.u32 %s1447_s15, 4  ;;  %s67_s19 = sshll.u32 %s2144_s4, 4  ;;  %s48_s16 = int_to_ptr.vmem [resolvable:$true] %s47_s16  ;;  %s68_s19 = int_to_ptr.hbm [resolvable:$true] %s67_s19 }
   0xd   :  { %50 = dma.hbm_to_vmem [thread:$0]  %s46_s13, 128, %s48_s16, [#allocation7]  }
   0xe   :  { %s1448_s0 = smov [#allocation11]  }
   0xf   :  { %s69_s20 = sshll.u32 %s1448_s0, 4  ;;  %s70_s20 = int_to_ptr.vmem [resolvable:$true] %s69_s20 }
  0x10   :  { %72 = dma.hbm_to_vmem [thread:$0]  %s68_s19, 128, %s70_s20, [#allocation10]  }
  0x11   :  { %1434 = dma.done.wait [#allocation4], 256  }
  0x12   :  { %1435 = vsyncadd [#allocation4], 4294967040 }
  0x13   :  { %1436 = dma.done.wait [#allocation7], 640  }
  0x14   :  { %1437 = vsyncadd [#allocation7], 4294966656 }
  0x15   :  { %1438 = dma.done.wait [#allocation10], 256  }
  0x16   :  { %1439 = vsyncadd [#allocation10], 4294967040  ;;  %v1449_v0 = vmov 0   ;;  %v1450_v1 = vmov 2   ;;  %v1451_v2 = vmov 5   ;;  %v1550_v3 = vld [vmem:[#allocation8] sm:$0xff]  ;;  %v102_v34 = vlaneseq }
  0x17   :  { %1208 = vset.pattern.permute.xlu1 %v1449_v0  ;;  %1210 = vset.pattern.permute.xlu2 %v1450_v1  ;;  %v1552_v4 = vld [vmem:[#allocation3] sm:$0xff]  ;;  %s1452_s2 = smov 17   ;;  %v1558_v5 = vld [vmem:[#allocation3 + $0x8] sm:$0xff]  ;;  %v1453_v6 = vmov 1   ;;  %v1454_v7 = vmov 4   ;;  %v2154_v8 = vmov 3  }
  0x18   :  { %1213 = vset.pattern.permute.xlu0 %v1451_v2  ;;  %118 = vperm.xlu1 %1208, %v1550_v3   ;;  %s1456_s4 = smov 15   ;;  %v1457_v9 = vmov 6   ;;  %v1458_v10 = vmov 7   ;;  %v1459_v11 = vmov 8   ;;  %v1460_v12 = vmov 9   ;;  %s1463_s21 = smov 1  }
  0x19   :  { %98 = vrot.lane.b32.xlu0 %v1552_v4, %s1452_s2  ;;  %138 = vperm.xlu2 %1210, %v1550_v3   ;;  %v1461_v13 = vmov 11   ;;  %v1462_v14 = vmov 10   ;;  %v1464_v15 = vmov 16   ;;  %v1465_v16 = vmov 13   ;;  %s1470_s22 = smov 113   ;;  %s1474_s23 = smov 127  }
  0x1a   :  { %v1466_v17 = vmov 12   ;;  %v1467_v18 = vmov 19   ;;  %v1468_v19 = vmov 15   ;;  %v1469_v20 = vmov 14   ;;  %s1482_s24 = smov 112   ;;  %s1487_s25 = smov 111  }
  0x1b   :  { %v2161_v21 = vmov 25   ;;  %v1472_v22 = vmov 18   ;;  %v1473_v23 = vmov 17   ;;  %v2169_v24 = vmov 21   ;;  %s1492_s26 = smov 4   ;;  %s1493_s27 = smov 125  }
  0x1c   :  { %v1476_v25 = vmov 20   ;;  %v2153_v27 = vmov 28   ;;  %v1478_v29 = vmov 22   ;;  %v2167_v30 = vmov 24   ;;  %s1142_s10 = sshll.u32 %s2146_s6, 4  ;;  %s1143_s10 = int_to_ptr.hbm [resolvable:$true] %s1142_s10 }
  0x1d   :  { %v2151_v31 = vmov 31   ;;  %v2168_v33 = vmov 23   ;;  %v1640_v37 = vand.u32 127, %v102_v34  ;;  %v1644_v38 = vld [vmem:[#allocation6] ss:$8 sm:$0x3] }
  0x1e   :  { %v2162_v40 = vmov 27   ;;  %v2166_v41 = vmov 26   ;;  %v2150_v42 = vperm.slane %v1644_v38, 0  ;;  %v2147_v43 = vperm.slane %v1644_v38, 1 }
  0x1f   :  { %vm104_vm0 = vcmp.lt.s32.totalorder %v1640_v37, 17  ;;  %v1662_v50 = vld [vmem:[#allocation6 + $0x1] ss:$8 sm:$0x3]  ;;  %vm159_vm1 = vcmp.lt.s32.totalorder %v1640_v37, 16  ;;  %v2164_v34 = vmov 29  }
  0x20   :  { %1209 = vset.pattern.permute.xlu1 %v1453_v6  ;;  %v2148_v53 = vperm.slane %v1662_v50, 0  ;;  %v2149_v54 = vperm.slane %v1662_v50, 1  ;;  %vm213_vm2 = vcmp.lt.s32.totalorder %v1640_v37, 15  ;;  %vm267_vm3 = vcmp.lt.s32.totalorder %v1640_v37, 1 }
  0x21   :  { %100 = vrot.lane.b32.xlu0 %v1558_v5, %s1452_s2  ;;  %128 = vperm.xlu1 %1209, %v1550_v3   ;;  %vm359_vm4 = vcmp.lt.s32.totalorder %v1640_v37, 127  ;;  %vm413_vm5 = vcmp.lt.s32.totalorder %v1640_v37, 113  ;;  %vm467_vm6 = vcmp.lt.s32.totalorder %v1640_v37, 112  ;;  %vm521_vm7 = vcmp.lt.s32.totalorder %v1640_v37, 111 }
  0x22   :  { %155 = vrot.lane.b32.xlu2 %v1552_v4, %s1444_s30 }
  0x23   :  { %1212 = vset.pattern.permute.xlu2 %v1454_v7 }
  0x29   :  { %157 = vrot.lane.b32.xlu0 %v1558_v5, %s1444_s30  ;;  %1211 = vset.pattern.permute.xlu1 %v2154_v8 }
  0x2a   :  { %172 = vperm.xlu2 %1212, %v1550_v3   ;;  %148 = vperm.xlu1 %1211, %v1550_v3  }
  0x31   :  { %182 = vperm.xlu0 %1213, %v1550_v3  }
  0x32   :  { %209 = vrot.lane.b32.xlu2 %v1552_v4, %s1456_s4  ;;  %1214 = vset.pattern.permute.xlu1 %v1457_v9 }
  0x33   :  { %1215 = vset.pattern.permute.xlu2 %v1458_v10  ;;  %192 = vperm.xlu1 %1214, %v1550_v3  }
  0x39   :  { %1216 = vset.pattern.permute.xlu0 %v1459_v11 }
  0x3a   :  { %226 = vperm.xlu0 %1216, %v1550_v3   ;;  %202 = vperm.xlu2 %1215, %v1550_v3  }
  0x3b   :  { %211 = vrot.lane.b32.xlu1 %v1558_v5, %s1456_s4 }
  0x3c   :  { %1217 = vset.pattern.permute.xlu1 %v1460_v12 }
  0x42   :  { %1219 = vset.pattern.permute.xlu0 %v1461_v13  ;;  %1218 = vset.pattern.permute.xlu2 %v1462_v14 }
  0x43   :  { %256 = vperm.xlu0 %1219, %v1550_v3   ;;  %246 = vperm.xlu2 %1218, %v1550_v3  }
  0x44   :  { %236 = vperm.xlu1 %1217, %v1550_v3  }
  0x4b   :  { %265 = vrot.lane.b32.xlu2 %v1558_v5, %s1463_s21  ;;  %1224 = vset.pattern.permute.xlu0 %v1464_v15 }
  0x4c   :  { %263 = vrot.lane.b32.xlu1 %v1552_v4, %s1463_s21  ;;  %1221 = vset.pattern.permute.xlu2 %v1465_v16 }
  0x4d   :  { %1220 = vset.pattern.permute.xlu1 %v1466_v17  ;;  %318 = vperm.xlu0 %1224, %v1550_v3  }
  0x53   :  { %290 = vperm.xlu2 %1221, %v1550_v3  }
  0x54   :  { %280 = vperm.xlu1 %1220, %v1550_v3  }
  0x55   :  { %1227 = vset.pattern.permute.xlu0 %v1467_v18 }
  0x56   :  { %348 = vperm.xlu0 %1227, %v1550_v3  }
  0x5b   :  { %1223 = vset.pattern.permute.xlu2 %v1468_v19 }
  0x5c   :  { %1222 = vset.pattern.permute.xlu1 %v1469_v20  ;;  %310 = vperm.xlu2 %1223, %v1550_v3  }
  0x5d   :  { %300 = vperm.xlu1 %1222, %v1550_v3  }
  0x5e   :  { %411 = vrot.lane.b32.xlu0 %v1558_v5, %s1470_s22 }
  0x5f   :  { %1233 = vset.pattern.permute.xlu0 %v2161_v21 }
  0x64   :  { %1226 = vset.pattern.permute.xlu2 %v1472_v22 }
  0x65   :  { %1225 = vset.pattern.permute.xlu1 %v1473_v23  ;;  %338 = vperm.xlu2 %1226, %v1550_v3  }
  0x66   :  { %328 = vperm.xlu1 %1225, %v1550_v3   ;;  %436 = vperm.xlu0 %1233, %v1550_v3  }
  0x6d   :  { %357 = vrot.lane.b32.xlu2 %v1558_v5, %s1474_s23 }
  0x6e   :  { %355 = vrot.lane.b32.xlu1 %v1552_v4, %s1474_s23  ;;  %1229 = vset.pattern.permute.xlu2 %v2169_v24 }
  0x6f   :  { %1228 = vset.pattern.permute.xlu1 %v1476_v25  ;;  %1236 = vset.pattern.permute.xlu0 %v2153_v27 }
  0x70   :  { %480 = vperm.xlu0 %1236, %v1550_v3  }
  0x73   :  { %v1619_v26 = vpop.permute.xlu2 %138 }
  0x75   :  { %382 = vperm.xlu2 %1229, %v1550_v3  }
  0x76   :  { %372 = vperm.xlu1 %1228, %v1550_v3  }
  0x78   :  { %1239 = vset.pattern.permute.xlu0 %v2151_v31 }
  0x79   :  { %510 = vperm.xlu0 %1239, %v1550_v3  }
  0x7c   :  { %v1625_v28 = vpop.permute.xlu2 %155 }
  0x7d   :  { %409 = vrot.lane.b32.xlu2 %v1552_v4, %s1470_s22 }
  0x7e   :  { %1230 = vset.pattern.permute.xlu1 %v1478_v29  ;;  %1232 = vset.pattern.permute.xlu2 %v2167_v30 }
  0x7f   :  { %392 = vperm.xlu1 %1230, %v1550_v3  }
  0x81   :  { %1247 = vset.pattern.permute.xlu0 %v2154_v8 }
  0x84   :  { %v1634_v32 = vpop.permute.xlu2 %172 }
  0x85   :  { %426 = vperm.xlu2 %1232, %v1550_v3  }
  0x87   :  { %1231 = vset.pattern.permute.xlu1 %v2168_v33 }
  0x88   :  { %402 = vperm.xlu1 %1231, %v1550_v3  }
  0x8a   :  { %v119_v35 = vpop.permute.xlu1 %118 }
  0x8b   :  { %v99_v36 = vpop.permute.xlu0 %98 }
  0x8c   :  { %v1646_v39 = vpop.permute.xlu2 %209 }
  0x8d   :  { %463 = vrot.lane.b32.xlu2 %v1552_v4, %s1482_s24 }
  0x8e   :  { %1235 = vset.pattern.permute.xlu2 %v2162_v40 }
  0x90   :  { %1234 = vset.pattern.permute.xlu1 %v2166_v41 }
  0x91   :  { %446 = vperm.xlu1 %1234, %v1550_v3  }
  0x93   :  { %v101_v44 = vpop.permute.xlu0 %100  ;;  %v129_v47 = vpop.permute.xlu1 %128 }
  0x94   :  { %v105_v45 = vsel %vm104_vm0, %v99_v36, %v101_v44  ;;  %v106_v46 = vsel %vm104_vm0, %v101_v44, %v99_v36  ;;  %v203_v57 = vpop.permute.xlu2 %202 }
  0x95   :  { %v113_v48 = vmul.f32 %v2150_v42, %v106_v46  ;;  %v114_v49 = vmul.f32 %v2147_v43, %v105_v45  ;;  %456 = vperm.xlu2 %1235, %v1550_v3  }
  0x97   :  { %v125_v51 = vrot.slane %v113_v48, 2  ;;  %v126_v52 = vrot.slane %v114_v49, 2  ;;  %v135_v55 = vrot.slane %v113_v48, 4  ;;  %v136_v56 = vrot.slane %v114_v49, 4 }
  0x98   :  { %v121_v58 = vmul.f32 %v119_v35, %v113_v48  ;;  %v122_v59 = vmul.f32 %v119_v35, %v114_v49  ;;  %v145_v62 = vrot.slane %v113_v48, 6  ;;  %v146_v63 = vrot.slane %v114_v49, 6 }
  0x99   :  { %v131_v60 = vmul.f32 %v129_v47, %v125_v51  ;;  %v132_v61 = vmul.f32 %v129_v47, %v126_v52  ;;  %465 = vrot.lane.b32.xlu1 %v1558_v5, %s1482_s24  ;;  %v141_v46 = vmul.f32 %v1619_v26, %v135_v55  ;;  %v142_v43 = vmul.f32 %v1619_v26, %v136_v56 }
  0x9a   :  { %1237 = vset.pattern.permute.xlu1 %v2164_v34  ;;  %v2152_v55 = vmov 30  }
  0x9b   :  { %v133_v36 = vadd.f32 %v131_v60, %v121_v58  ;;  %v134_v44 = vadd.f32 %v132_v61, %v122_v59  ;;  %v158_v45 = vpop.permute.xlu0 %157 }
  0x9c   :  { %v160_v35 = vsel %vm159_vm1, %v1625_v28, %v158_v45  ;;  %v161_v47 = vsel %vm159_vm1, %v158_v45, %v1625_v28  ;;  %v149_v51 = vpop.permute.xlu1 %148 }
  0x9d   :  { %v169_v48 = vmul.f32 %v2148_v53, %v161_v47  ;;  %v170_v49 = vmul.f32 %v2149_v54, %v160_v35  ;;  %v143_v52 = vadd.f32 %v141_v46, %v133_v36  ;;  %v144_v58 = vadd.f32 %v142_v43, %v134_v44  ;;  %1238 = vset.pattern.permute.xlu2 %v2152_v55 }
  0x9e   :  { %v151_v26 = vmul.f32 %v149_v51, %v145_v62  ;;  %v152_v56 = vmul.f32 %v149_v51, %v146_v63  ;;  %500 = vperm.xlu2 %1238, %v1550_v3   ;;  %v247_v62 = vpop.permute.xlu2 %246 }
  0x9f   :  { %v199_v59 = vrot.slane %v169_v48, 6  ;;  %v200_v60 = vrot.slane %v170_v49, 6  ;;  %v175_v28 = vmul.f32 %v1634_v32, %v169_v48  ;;  %v176_v61 = vmul.f32 %v1634_v32, %v170_v49 }
  0xa0   :  { %v153_v45 = vadd.f32 %v151_v26, %v143_v52  ;;  %v154_v47 = vadd.f32 %v152_v56, %v144_v58  ;;  %v179_v44 = vrot.slane %v169_v48, 2  ;;  %v180_v46 = vrot.slane %v170_v49, 2  ;;  %v1693_v56 = vld [vmem:[#allocation6 + $0x2] ss:$8 sm:$0x3] }
  0xa1   :  { %v205_v53 = vmul.f32 %v203_v57, %v199_v59  ;;  %v206_v35 = vmul.f32 %v203_v57, %v200_v60  ;;  %490 = vperm.xlu1 %1237, %v1550_v3   ;;  %v189_v42 = vrot.slane %v169_v48, 4  ;;  %v190_v31 = vrot.slane %v170_v49, 4 }
  0xa2   :  { %v177_v43 = vadd.f32 %v175_v28, %v153_v45  ;;  %v178_v36 = vadd.f32 %v176_v61, %v154_v47  ;;  %v2159_v52 = vmov 33   ;;  %v2160_v48 = vmov 32  }
  0xa3   :  { %v183_v63 = vpop.permute.xlu0 %182 }
  0xa4   :  { %v185_v51 = vmul.f32 %v183_v63, %v179_v44  ;;  %v186_v54 = vmul.f32 %v183_v63, %v180_v46 }
  0xa5   :  { %v193_v8 = vpop.permute.xlu1 %192 }
  0xa6   :  { %v187_v55 = vadd.f32 %v185_v51, %v177_v43  ;;  %v188_v27 = vadd.f32 %v186_v54, %v178_v36  ;;  %519 = vrot.lane.b32.xlu2 %v1558_v5, %s1487_s25  ;;  %v195_v32 = vmul.f32 %v193_v8, %v189_v42  ;;  %v196_v57 = vmul.f32 %v193_v8, %v190_v31  ;;  %v266_v31 = vpop.permute.xlu2 %265 }
  0xa7   :  { %1241 = vset.pattern.permute.xlu2 %v2159_v52  ;;  %v2156_v42 = vperm.slane %v1693_v56, 0  ;;  %v2155_v8 = vperm.slane %v1693_v56, 1 }
  0xa8   :  { %v197_v58 = vadd.f32 %v195_v32, %v187_v55  ;;  %v198_v26 = vadd.f32 %v196_v57, %v188_v27  ;;  %v2158_v32 = vmov 35  }
  0xa9   :  { %517 = vrot.lane.b32.xlu1 %v1552_v4, %s1487_s25 }
  0xaa   :  { %1240 = vset.pattern.permute.xlu1 %v2160_v48  ;;  %v207_v54 = vadd.f32 %v205_v53, %v197_v58  ;;  %v208_v49 = vadd.f32 %v206_v35, %v198_v26 }
  0xac   :  { %v227_v59 = vpop.permute.xlu0 %226 }
  0xad   :  { %v212_v55 = vpop.permute.xlu1 %211 }
  0xae   :  { %544 = vperm.xlu2 %1241, %v1550_v3   ;;  %v214_v27 = vsel %vm213_vm2, %v1646_v39, %v212_v55  ;;  %v215_v53 = vsel %vm213_vm2, %v212_v55, %v1646_v39  ;;  %v291_v51 = vpop.permute.xlu2 %290 }
  0xaf   :  { %v223_v60 = vmul.f32 %v2156_v42, %v215_v53  ;;  %v224_v28 = vmul.f32 %v2155_v8, %v214_v27  ;;  %v2157_v53 = vmov 34  }
  0xb1   :  { %534 = vperm.xlu1 %1240, %v1550_v3   ;;  %v229_v61 = vmul.f32 %v227_v59, %v223_v60  ;;  %v230_v45 = vmul.f32 %v227_v59, %v224_v28  ;;  %v233_v43 = vrot.slane %v223_v60, 2  ;;  %v234_v36 = vrot.slane %v224_v28, 2 }
  0xb2   :  { %v243_v44 = vrot.slane %v223_v60, 4  ;;  %v244_v46 = vrot.slane %v224_v28, 4  ;;  %v253_v58 = vrot.slane %v223_v60, 6  ;;  %v254_v26 = vrot.slane %v224_v28, 6 }
  0xb3   :  { %v231_v47 = vadd.f32 %v229_v61, %v207_v54  ;;  %v232_v35 = vadd.f32 %v230_v45, %v208_v49 }
  0xb4   :  { %v249_v54 = vmul.f32 %v247_v62, %v243_v44  ;;  %v250_v49 = vmul.f32 %v247_v62, %v244_v46  ;;  %v1719_v46 = vld [vmem:[#allocation6 + $0x3] ss:$8 sm:$0x3] }
  0xb5   :  { %v257_v55 = vpop.permute.xlu0 %256 }
  0xb6   :  { %v237_v63 = vpop.permute.xlu1 %236  ;;  %1243 = vset.pattern.permute.xlu2 %v2158_v32  ;;  %v259_v61 = vmul.f32 %v257_v55, %v253_v58  ;;  %v260_v45 = vmul.f32 %v257_v55, %v254_v26  ;;  %v311_v60 = vpop.permute.xlu2 %310 }
  0xb7   :  { %v239_v39 = vmul.f32 %v237_v63, %v233_v43  ;;  %v240_v57 = vmul.f32 %v237_v63, %v234_v36  ;;  %564 = vperm.xlu2 %1243, %v1550_v3  }
  0xb9   :  { %v241_v27 = vadd.f32 %v239_v39, %v231_v47  ;;  %v242_v59 = vadd.f32 %v240_v57, %v232_v35  ;;  %1242 = vset.pattern.permute.xlu1 %v2157_v53 }
  0xba   :  { %554 = vperm.xlu1 %1242, %v1550_v3  }
  0xbb   :  { %v251_v8 = vadd.f32 %v249_v54, %v241_v27  ;;  %v252_v42 = vadd.f32 %v250_v49, %v242_v59 }
  0xbd   :  { %v261_v43 = vadd.f32 %v259_v61, %v251_v8  ;;  %v262_v36 = vadd.f32 %v260_v45, %v252_v42  ;;  %v2163_v42 = vperm.slane %v1719_v46, 0 }
  0xbe   :  { %v264_v63 = vpop.permute.xlu1 %263 }
  0xbf   :  { %1244 = vset.pattern.permute.xlu2 %v1449_v0  ;;  %v339_v47 = vpop.permute.xlu2 %338  ;;  %v2165_v0 = vperm.slane %v1719_v46, 1  ;;  %v268_v39 = vsel %vm267_vm3, %v264_v63, %v266_v31  ;;  %v269_v57 = vsel %vm267_vm3, %v266_v31, %v264_v63 }
  0xc0   :  { %v277_v58 = vmul.f32 %v2163_v42, %v269_v57 }
  0xc1   :  { %v278_v26 = vmul.f32 %v2165_v0, %v268_v39 }
  0xc2   :  { %1245 = vset.pattern.permute.xlu1 %v1453_v6  ;;  %v287_v49 = vrot.slane %v277_v58, 2  ;;  %v297_v32 = vrot.slane %v277_v58, 4  ;;  %v307_v40 = vrot.slane %v277_v58, 6 }
  0xc3   :  { %v288_v61 = vrot.slane %v278_v26, 2  ;;  %v298_v52 = vrot.slane %v278_v26, 4  ;;  %v308_v57 = vrot.slane %v278_v26, 6 }
  0xc4   :  { %v293_v48 = vmul.f32 %v291_v51, %v287_v49  ;;  %v313_v33 = vmul.f32 %v311_v60, %v307_v40 }
  0xc5   :  { %v294_v21 = vmul.f32 %v291_v51, %v288_v61  ;;  %v314_v24 = vmul.f32 %v311_v60, %v308_v57 }
  0xc6   :  { %v281_v28 = vpop.permute.xlu1 %280 }
  0xc7   :  { %v1717_v35 = vpop.permute.xlu2 %357  ;;  %v283_v55 = vmul.f32 %v281_v28, %v277_v58  ;;  %v284_v27 = vmul.f32 %v281_v28, %v278_v26  ;;  %v319_v28 = vpop.permute.xlu0 %318 }
  0xc9   :  { %v285_v45 = vadd.f32 %v283_v55, %v261_v43  ;;  %v286_v53 = vadd.f32 %v284_v27, %v262_v36  ;;  %v326_v43 = vrot.slane %v1558_v5, 2  ;;  %v325_v36 = vrot.slane %v1552_v4, 2 }
  0xcb   :  { %v295_v42 = vadd.f32 %v293_v48, %v285_v45  ;;  %v296_v34 = vadd.f32 %v294_v21, %v286_v53  ;;  %v336_v21 = vrot.slane %v1558_v5, 4 }
  0xcd   :  { %v342_v58 = vmul.f32 %v339_v47, %v336_v21 }
  0xcf   :  { %v301_v62 = vpop.permute.xlu1 %300  ;;  %v1721_v3 = vpop.permute.xlu2 %382 }
  0xd0   :  { %v303_v31 = vmul.f32 %v301_v62, %v297_v32  ;;  %v304_v63 = vmul.f32 %v301_v62, %v298_v52  ;;  %v321_v52 = vmul.f32 %v319_v28, %v1552_v4  ;;  %v322_v32 = vmul.f32 %v319_v28, %v1558_v5  ;;  %v1744_v62 = vld [vmem:[#allocation6 + $0x5] ss:$8 sm:$0x3]  ;;  %v349_v49 = vpop.permute.xlu0 %348 }
  0xd1   :  { %v365_v61 = vperm.slane %v1744_v62, 0 }
  0xd2   :  { %v305_v39 = vadd.f32 %v303_v31, %v295_v42  ;;  %v306_v0 = vadd.f32 %v304_v63, %v296_v34  ;;  %v335_v34 = vrot.slane %v1552_v4, 4 }
  0xd4   :  { %v315_v55 = vadd.f32 %v313_v33, %v305_v39  ;;  %v316_v51 = vadd.f32 %v314_v24, %v306_v0  ;;  %v341_v42 = vmul.f32 %v339_v47, %v335_v34  ;;  %v346_v24 = vrot.slane %v1558_v5, 6 }
  0xd5   :  { %v345_v33 = vrot.slane %v1552_v4, 6 }
  0xd6   :  { %v323_v40 = vadd.f32 %v321_v52, %v315_v55  ;;  %v324_v60 = vadd.f32 %v322_v32, %v316_v51  ;;  %v352_v63 = vmul.f32 %v349_v49, %v346_v24  ;;  %v1761_v55 = vld [vmem:[#allocation6 + $0x6] ss:$8 sm:$0x3] }
  0xd7   :  { %v1734_v59 = vpop.permute.xlu2 %409  ;;  %v351_v5 = vmul.f32 %v349_v49, %v345_v33  ;;  %v419_v21 = vperm.slane %v1761_v55, 0 }
  0xd8   :  { %v329_v44 = vpop.permute.xlu1 %328 }
  0xd9   :  { %v331_v48 = vmul.f32 %v329_v44, %v325_v36  ;;  %v332_v53 = vmul.f32 %v329_v44, %v326_v43  ;;  %v366_v44 = vperm.slane %v1744_v62, 1 }
  0xdb   :  { %v333_v26 = vadd.f32 %v331_v48, %v323_v40  ;;  %v334_v27 = vadd.f32 %v332_v53, %v324_v60  ;;  %v412_v60 = vpop.permute.xlu0 %411 }
  0xdd   :  { %v344_v4 = vadd.f32 %v342_v58, %v334_v27  ;;  %v343_v57 = vadd.f32 %v341_v42, %v333_v26  ;;  %v2170_v42 = vperm.slane %v1761_v55, 1 }
  0xdf   :  { %v1736_v30 = vpop.permute.xlu2 %426  ;;  %v353_v51 = vadd.f32 %v351_v5, %v343_v57  ;;  %v354_v52 = vadd.f32 %v352_v63, %v344_v4 }
  0xe0   :  { %v356_v8 = vpop.permute.xlu1 %355 }
  0xe1   :  { %v360_v45 = vsel %vm359_vm4, %v356_v8, %v1717_v35  ;;  %v361_v47 = vsel %vm359_vm4, %v1717_v35, %v356_v8 }
  0xe2   :  { %v369_v39 = vmul.f32 %v365_v61, %v360_v45  ;;  %v370_v28 = vmul.f32 %v366_v44, %v361_v47  ;;  %v415_v47 = vsel %vm413_vm5, %v412_v60, %v1734_v59 }
  0xe4   :  { %v379_v35 = vrot.slane %v369_v39, 2  ;;  %v380_v8 = vrot.slane %v370_v28, 2  ;;  %v389_v53 = vrot.slane %v369_v39, 4  ;;  %v390_v40 = vrot.slane %v370_v28, 4 }
  0xe5   :  { %v399_v24 = vrot.slane %v369_v39, 6  ;;  %v400_v33 = vrot.slane %v370_v28, 6 }
  0xe6   :  { %v385_v26 = vmul.f32 %v1721_v3, %v379_v35  ;;  %v386_v27 = vmul.f32 %v1721_v3, %v380_v8  ;;  %v1778_v8 = vld [vmem:[#allocation6 + $0x7] ss:$8 sm:$0x3] }
  0xe7   :  { %v464_v31 = vpop.permute.xlu2 %463 }
  0xe8   :  { %v373_v54 = vpop.permute.xlu1 %372 }
  0xe9   :  { %v375_v43 = vmul.f32 %v373_v54, %v369_v39  ;;  %v376_v36 = vmul.f32 %v373_v54, %v370_v28  ;;  %v414_v54 = vsel %vm413_vm5, %v1734_v59, %v412_v60  ;;  %v424_v28 = vmul.f32 %v2170_v42, %v415_v47 }
  0xeb   :  { %v377_v34 = vadd.f32 %v375_v43, %v353_v51  ;;  %v378_v48 = vadd.f32 %v376_v36, %v354_v52  ;;  %v423_v43 = vmul.f32 %v419_v21, %v414_v54  ;;  %v434_v59 = vrot.slane %v424_v28, 2 }
  0xed   :  { %v387_v5 = vadd.f32 %v385_v26, %v377_v34  ;;  %v388_v63 = vadd.f32 %v386_v27, %v378_v48  ;;  %v429_v34 = vmul.f32 %v1736_v30, %v423_v43  ;;  %v437_v48 = vpop.permute.xlu0 %436 }
  0xef   :  { %v457_v58 = vpop.permute.xlu2 %456 }
  0xf1   :  { %v393_v41 = vpop.permute.xlu1 %392 }
  0xf2   :  { %v395_v49 = vmul.f32 %v393_v41, %v389_v53  ;;  %v396_v45 = vmul.f32 %v393_v41, %v390_v40  ;;  %v433_v41 = vrot.slane %v423_v43, 2  ;;  %v443_v53 = vrot.slane %v423_v43, 4 }
  0xf3   :  { %v444_v40 = vrot.slane %v424_v28, 4 }
  0xf4   :  { %v397_v36 = vadd.f32 %v395_v49, %v387_v5  ;;  %v398_v39 = vadd.f32 %v396_v45, %v388_v63  ;;  %v439_v49 = vmul.f32 %v437_v48, %v433_v41  ;;  %v440_v45 = vmul.f32 %v437_v48, %v434_v59 }
  0xf5   :  { %v453_v63 = vrot.slane %v423_v43, 6 }
  0xf8   :  { %v501_v35 = vpop.permute.xlu2 %500 }
  0xfa   :  { %v403_v0 = vpop.permute.xlu1 %402 }
  0xfb   :  { %v405_v4 = vmul.f32 %v403_v0, %v399_v24  ;;  %v406_v57 = vmul.f32 %v403_v0, %v400_v33  ;;  %v430_v0 = vmul.f32 %v1736_v30, %v424_v28  ;;  %v473_v24 = vperm.slane %v1778_v8, 0 }
  0xfc   :  { %v474_v33 = vperm.slane %v1778_v8, 1 }
  0xfd   :  { %v407_v3 = vadd.f32 %v405_v4, %v397_v36  ;;  %v408_v52 = vadd.f32 %v406_v57, %v398_v39  ;;  %v454_v4 = vrot.slane %v424_v28, 6 }
  0xff   :  { %v431_v60 = vadd.f32 %v429_v34, %v407_v3  ;;  %v432_v54 = vadd.f32 %v430_v0, %v408_v52  ;;  %v459_v0 = vmul.f32 %v457_v58, %v453_v63  ;;  %v460_v42 = vmul.f32 %v457_v58, %v454_v4 }
 0x101   :  { %v441_v57 = vadd.f32 %v439_v49, %v431_v60  ;;  %v442_v36 = vadd.f32 %v440_v45, %v432_v54  ;;  %v1794_v54 = vld [vmem:[#allocation6 + $0x10] ss:$8 sm:$0x3] }
 0x102   :  { %v2171_v63 = vperm.slane %v1794_v54, 1 }
 0x103   :  { %v447_v32 = vpop.permute.xlu1 %446 }
 0x104   :  { %v449_v30 = vmul.f32 %v447_v32, %v443_v53  ;;  %v450_v47 = vmul.f32 %v447_v32, %v444_v40 }
 0x106   :  { %v451_v52 = vadd.f32 %v449_v30, %v441_v57  ;;  %v452_v34 = vadd.f32 %v450_v47, %v442_v36  ;;  %v527_v47 = vperm.slane %v1794_v54, 0 }
 0x108   :  { %v461_v43 = vadd.f32 %v459_v0, %v451_v52  ;;  %v462_v28 = vadd.f32 %v460_v42, %v452_v34 }
 0x10b   :  { %v466_v51 = vpop.permute.xlu1 %465 }
 0x10c   :  { %v468_v26 = vsel %vm467_vm6, %v464_v31, %v466_v51  ;;  %v469_v27 = vsel %vm467_vm6, %v466_v51, %v464_v31  ;;  %v481_v31 = vpop.permute.xlu0 %480  ;;  %v520_v51 = vpop.permute.xlu2 %519 }
 0x10d   :  { %v477_v39 = vmul.f32 %v473_v24, %v468_v26  ;;  %v478_v3 = vmul.f32 %v474_v33, %v469_v27 }
 0x10f   :  { %v483_v41 = vmul.f32 %v481_v31, %v477_v39  ;;  %v484_v59 = vmul.f32 %v481_v31, %v478_v3  ;;  %v487_v32 = vrot.slane %v477_v39, 2  ;;  %v488_v48 = vrot.slane %v478_v3, 2 }
 0x110   :  { %v497_v49 = vrot.slane %v477_v39, 4  ;;  %v498_v45 = vrot.slane %v478_v3, 4  ;;  %v507_v4 = vrot.slane %v477_v39, 6  ;;  %v508_v57 = vrot.slane %v478_v3, 6 }
 0x111   :  { %v485_v26 = vadd.f32 %v483_v41, %v461_v43  ;;  %v486_v27 = vadd.f32 %v484_v59, %v462_v28 }
 0x112   :  { %v503_v36 = vmul.f32 %v501_v35, %v497_v49  ;;  %v504_v52 = vmul.f32 %v501_v35, %v498_v45 }
 0x113   :  { %v491_v5 = vpop.permute.xlu1 %490 }
 0x114   :  { %v493_v53 = vmul.f32 %v491_v5, %v487_v32  ;;  %v494_v40 = vmul.f32 %v491_v5, %v488_v48  ;;  %v511_v34 = vpop.permute.xlu0 %510  ;;  %v545_v0 = vpop.permute.xlu2 %544 }
 0x115   :  { %v513_v43 = vmul.f32 %v511_v34, %v507_v4  ;;  %v514_v28 = vmul.f32 %v511_v34, %v508_v57 }
 0x116   :  { %v495_v58 = vadd.f32 %v493_v53, %v485_v26  ;;  %v496_v30 = vadd.f32 %v494_v40, %v486_v27 }
 0x118   :  { %v505_v31 = vadd.f32 %v503_v36, %v495_v58  ;;  %v506_v41 = vadd.f32 %v504_v52, %v496_v30 }
 0x11a   :  { %v516_v39 = vadd.f32 %v514_v28, %v506_v41 }
 0x11b   :  { %v518_v60 = vpop.permute.xlu1 %517 }
 0x11c   :  { %v522_v42 = vsel %vm521_vm7, %v518_v60, %v520_v51  ;;  %v523_v5 = vsel %vm521_vm7, %v520_v51, %v518_v60  ;;  %v515_v51 = vadd.f32 %v513_v43, %v505_v31  ;;  %v565_v36 = vpop.permute.xlu2 %564 }
 0x11d   :  { %v531_v59 = vmul.f32 %v527_v47, %v522_v42  ;;  %v532_v32 = vmul.f32 %v2171_v63, %v523_v5 }
 0x11f   :  { %v541_v3 = vrot.slane %v531_v59, 2  ;;  %v542_v60 = vrot.slane %v532_v32, 2  ;;  %v561_v27 = vrot.slane %v531_v59, 6  ;;  %v562_v49 = vrot.slane %v532_v32, 6 }
 0x120   :  { %v551_v30 = vrot.slane %v531_v59, 4  ;;  %v552_v42 = vrot.slane %v532_v32, 4 }
 0x121   :  { %v547_v45 = vmul.f32 %v545_v0, %v541_v3  ;;  %v548_v58 = vmul.f32 %v545_v0, %v542_v60  ;;  %v567_v34 = vmul.f32 %v565_v36, %v561_v27 }
 0x123   :  { %v535_v48 = vpop.permute.xlu1 %534 }
 0x124   :  { %v537_v53 = vmul.f32 %v535_v48, %v531_v59  ;;  %v538_v40 = vmul.f32 %v535_v48, %v532_v32  ;;  %v568_v48 = vmul.f32 %v565_v36, %v562_v49  ;;  %v1824_v49 = vld [vmem:[#allocation9] sm:$0xff] }
 0x126   :  { %v539_v35 = vadd.f32 %v537_v53, %v515_v51  ;;  %v540_v26 = vadd.f32 %v538_v40, %v516_v39 }
 0x128   :  { %v549_v5 = vadd.f32 %v547_v45, %v539_v35  ;;  %v550_v63 = vadd.f32 %v548_v58, %v540_v26  ;;  %v1820_v35 = vld [vmem:[#allocation11] sm:$0xff] }
 0x129   :  { %vm581_vm8 = vcmp.gt.f32.partialorder %v1820_v35, 0.5 }
 0x12c   :  { %v555_v52 = vpop.permute.xlu1 %554 }
 0x12d   :  { %v557_v4 = vmul.f32 %v555_v52, %v551_v30  ;;  %v558_v57 = vmul.f32 %v555_v52, %v552_v42 }
 0x12f   :  { %v559_v31 = vadd.f32 %v557_v4, %v549_v5  ;;  %v560_v41 = vadd.f32 %v558_v57, %v550_v63 }
 0x131   :  { %v1806_v43 = vadd.f32 %v567_v34, %v559_v31  ;;  %v1808_v28 = vadd.f32 %v568_v48, %v560_v41 }
 0x133   :  { %v571_v53 = vadd.f32 %v1808_v28, %v1806_v43  ;;  %v574_v0 = vmul.f32 %v1806_v43, %v1806_v43  ;;  %v575_v59 = vmul.f32 %v1808_v28, %v1808_v28 }
 0x135   :  { %572 = vadd.xlane.f32.xlu0 %v571_v53  ;;  %v576_v32 = vadd.f32 %v575_v59, %v574_v0 }
 0x137   :  { %577 = vadd.xlane.f32.xlu1 %v576_v32 }
 0x149   :  { %693 = vperm.xlu0 %1247, %v1824_v49  }
 0x150   :  { %673 = vperm.xlu1 %1245, %v1824_v49  }
 0x151   :  { %1249 = vset.pattern.permute.xlu0 %v1454_v7 }
 0x158   :  { %1248 = vset.pattern.permute.xlu1 %v1454_v7 }
 0x159   :  { %709 = vperm.xlu1 %1248, %v1824_v49  }
 0x161   :  { %1251 = vset.pattern.permute.xlu1 %v1457_v9 }
 0x162   :  { %729 = vperm.xlu1 %1251, %v1824_v49  }
 0x16a   :  { %1252 = vset.pattern.permute.xlu1 %v1458_v10 }
 0x16b   :  { %739 = vperm.xlu1 %1252, %v1824_v49  }
 0x173   :  { %1255 = vset.pattern.permute.xlu1 %v1462_v14 }
 0x174   :  { %775 = vperm.xlu1 %1255, %v1824_v49  }
 0x17c   :  { %1258 = vset.pattern.permute.xlu1 %v1453_v6 }
 0x1a8   :  { %v573_v40 = vpop.xlane.xlu0 %572 }
 0x1a9   :  { %v579_v51 = vrot.slane %v573_v40, 1  ;;  %v580_v63 = vrot.slane %v573_v40, 7 }
 0x1aa   :  { %v578_v39 = vpop.xlane.xlu1 %577 }
 0x1ab   :  { %583 = vrot.lane.b32.xlu2 %v579_v51, %s1492_s26  ;;  %v593_v3 = vrot.slane %v578_v39, 1  ;;  %v594_v60 = vrot.slane %v578_v39, 7 }
 0x1b3   :  { %587 = vrot.lane.b32.xlu2 %v580_v63, %s1492_s26 }
 0x1bb   :  { %596 = vrot.lane.b32.xlu2 %v593_v3, %s1492_s26 }
 0x1c2   :  { %v1878_v14 = vpop.permute.xlu1 %673 }
 0x1c3   :  { %600 = vrot.lane.b32.xlu2 %v594_v60, %s1492_s26 }
 0x1cb   :  { %620 = vrot.lane.b32.xlu2 %v1820_v35, %s1492_s26 }
 0x1d3   :  { %663 = vperm.xlu2 %1244, %v1824_v49  }
 0x1db   :  { %1246 = vset.pattern.permute.xlu2 %v1450_v1 }
 0x1dc   :  { %683 = vperm.xlu2 %1246, %v1824_v49  }
 0x1e4   :  { %1250 = vset.pattern.permute.xlu2 %v1451_v2 }
 0x205   :  { %v584_v26 = vpop.permute.xlu2 %583 }
 0x20d   :  { %v588_v27 = vpop.permute.xlu2 %587 }
 0x20e   :  { %v590_v58 = vsel %vm581_vm8, %v584_v26, %v588_v27  ;;  %v2175_v27 = vmov 26  }
 0x20f   :  { %v591_v30 = vadd.f32 %v590_v58, %v573_v40 }
 0x211   :  { %v592_v42 = vmul.f32 0.001953125, %v591_v30  ;;  %v2177_v30 = vmov 27  }
 0x213   :  { %v606_v1 = vmul.f32 %v592_v42, %v592_v42 }
 0x215   :  { %v597_v45 = vpop.permute.xlu2 %596 }
 0x21d   :  { %v601_v36 = vpop.permute.xlu2 %600 }
 0x21e   :  { %v603_v52 = vsel %vm581_vm8, %v597_v45, %v601_v36  ;;  %v2176_v45 = vmov 29   ;;  %v2179_v36 = vmov 32  }
 0x21f   :  { %v604_v5 = vadd.f32 %v603_v52, %v578_v39 }
 0x221   :  { %v605_v4 = vmul.f32 0.001953125, %v604_v5  ;;  %v2180_v5 = vmov 3  }
 0x223   :  { %v607_v57 = vsub.f32 %v605_v4, %v606_v1  ;;  %v2181_v1 = vmov 28   ;;  %v2182_v4 = vmov 30  }
 0x225   :  { %v608_v34 = vadd.f32 1e-05, %v607_v57  ;;  %v621_v0 = vpop.permute.xlu2 %620 }
 0x227   :  { %1284 = vrsqrt.f32 %v608_v34  ;;  %vm615_vm10 = vweird.f32 %v608_v34 }
 0x22d   :  { %v1285_v48 = vpop.eup %1284  ;;  %v1866_v6 = vpop.permute.xlu2 %663 }
 0x22e   :  { %v610_v31 = vmul.f32 %v1285_v48, %v608_v34  ;;  %vm616_vm9 = vweird.f32 %v1285_v48 }
 0x22f   :  { %vm617_vm11 = vmor %vm615_vm10, %vm616_vm9 }
 0x230   :  { %v611_v41 = vmul.f32 %v1285_v48, %v610_v31 }
 0x232   :  { %v612_v53 = vmul.f32 0.5, %v611_v41  ;;  %v2184_v41 = vmov 33  }
 0x234   :  { %v613_v2 = vsub.f32 1.5, %v612_v53 }
 0x236   :  { %v614_v9 = vmul.f32 %v1285_v48, %v613_v2  ;;  %v1868_v10 = vpop.permute.xlu2 %683 }
 0x238   :  { %v618_v59 = vsel %vm617_vm11, %v1285_v48, %v614_v9  ;;  %v2183_v48 = vmov 31   ;;  %v2185_v9 = vmov 35  }
 0x239   :  { %v623_v32 = vmul.f32 %v621_v0, %v618_v59 }
 0x23b   :  { %v631_v40 = vmul.f32 %v623_v32, %v592_v42  ;;  %626 = vperm.xlu0 %1249, %v623_v32   ;;  %v2178_v42 = vmov 25  }
 0x23d   :  { %633 = vrot.lane.b32.xlu2 %v631_v40, %s1493_s27  ;;  %v2186_v40 = vmov 34  }
 0x243   :  { %1254 = vset.pattern.permute.xlu0 %v1460_v12 }
 0x244   :  { %765 = vperm.xlu0 %1254, %v1824_v49  }
 0x245   :  { %719 = vperm.xlu2 %1250, %v1824_v49  }
 0x24c   :  { %1257 = vset.pattern.permute.xlu0 %v1466_v17 }
 0x24d   :  { %1253 = vset.pattern.permute.xlu2 %v1459_v11  ;;  %801 = vperm.xlu0 %1257, %v1824_v49  }
 0x24e   :  { %755 = vperm.xlu2 %1253, %v1824_v49  }
 0x255   :  { %1263 = vset.pattern.permute.xlu0 %v1473_v23 }
 0x256   :  { %1256 = vset.pattern.permute.xlu2 %v1461_v13  ;;  %849 = vperm.xlu0 %1263, %v1824_v49   ;;  %v2172_v13 = vmov 21  }
 0x257   :  { %785 = vperm.xlu2 %1256, %v1824_v49  }
 0x25e   :  { %1266 = vset.pattern.permute.xlu0 %v1476_v25  ;;  %v647_v25 = vstv %s2145_s5  ;;  %s1494_s5 = smov 2  }
 0x25f   :  { %1260 = vset.pattern.permute.xlu2 %v1469_v20 }
 0x260   :  { %821 = vperm.xlu2 %1260, %v1824_v49  }
 0x268   :  { %1262 = vset.pattern.permute.xlu2 %v1464_v15  ;;  %v1880_v15 = vpop.permute.xlu1 %709 }
 0x269   :  { %839 = vperm.xlu2 %1262, %v1824_v49  }
 0x270   :  { %v1882_v17 = vpop.permute.xlu1 %729 }
 0x271   :  { %1265 = vset.pattern.permute.xlu2 %v1467_v18 }
 0x272   :  { %869 = vperm.xlu2 %1265, %v1824_v49  }
 0x278   :  { %v1884_v18 = vpop.permute.xlu1 %739 }
 0x27a   :  { %1268 = vset.pattern.permute.xlu2 %v1478_v29 }
 0x280   :  { %v1888_v20 = vpop.permute.xlu1 %775 }
 0x297   :  { %v634_v11 = vpop.permute.xlu2 %633 }
 0x298   :  { %v636_v12 = vsub.f32 %v1820_v35, %v634_v11 }
 0x29a   :  { %639 = vperm.xlu1 %1258, %v636_v12  }
 0x29f   :  { %v1922_v58 = vpop.permute.xlu2 %719 }
 0x2a2   :  { %1259 = vset.pattern.permute.xlu1 %v1465_v16  ;;  %v1886_v16 = vpop.permute.xlu0 %693 }
 0x2a3   :  { %811 = vperm.xlu1 %1259, %v1824_v49  }
 0x2a8   :  { %v1933_v52 = vpop.permute.xlu2 %755 }
 0x2ab   :  { %1261 = vset.pattern.permute.xlu1 %v1468_v19 }
 0x2ac   :  { %831 = vperm.xlu1 %1261, %v1824_v49  }
 0x2ad   :  { %v627_v19 = vpop.permute.xlu0 %626 }
 0x2ae   :  { %v629_v23 = vmul.f32 %v627_v19, %v1806_v43  ;;  %v2173_v43 = vmov 23  }
 0x2b1   :  { %v1943_v57 = vpop.permute.xlu2 %785 }
 0x2b4   :  { %1264 = vset.pattern.permute.xlu1 %v1472_v22  ;;  %v630_v22 = vmul.f32 %v627_v19, %v1808_v28  ;;  %v2174_v28 = vmov 24   ;;  %v2187_v19 = vperm.slane %v1644_v38, 0 }
 0x2b5   :  { %859 = vperm.xlu1 %1264, %v1824_v49  }
 0x2b6   :  { %v1976_v11 = vpop.permute.xlu0 %765 }
 0x2ba   :  { %v1948_v34 = vpop.permute.xlu2 %821 }
 0x2bd   :  { %1267 = vset.pattern.permute.xlu1 %v2172_v13 }
 0x2c3   :  { %v1954_v31 = vpop.permute.xlu2 %839 }
 0x2cc   :  { %v1963_v53 = vpop.permute.xlu2 %869 }
 0x30c   :  { %v640_v29 = vpop.permute.xlu1 %639 }
 0x30d   :  { %v642_v51 = vadd.f32 %v640_v29, %v629_v23  ;;  %v643_v63 = vadd.f32 %v640_v29, %v630_v22  ;;  %v2188_v22 = vperm.slane %v1644_v38, 1 }
 0x30f   :  { %vm645_vm12 = vcmp.ge.f32.partialorder %v642_v51, 0.0  ;;  %vm646_vm13 = vcmp.ge.f32.partialorder %v643_v63, 0.0  ;;  %v648_v39 = vmul.f32 %v647_v25, %v642_v51  ;;  %v649_v3 = vmul.f32 %v647_v25, %v643_v63 }
 0x311   :  { %v1895_v60 = vsel %vm645_vm12, %v642_v51, %v648_v39  ;;  %v1897_v26 = vsel %vm646_vm13, %v643_v63, %v649_v3  ;;  %v1990_v3 = vpop.permute.xlu0 %801 }
 0x312   :  { %748 = vrot.lane.b32.xlu0 %v1897_v26, %s1456_s4  ;;  %700 = vrot.lane.b32.xlu1 %v1895_v60, %s1444_s30 }
 0x313   :  { %652 = vrot.lane.b32.xlu2 %v1895_v60, %s1452_s2 }
 0x315   :  { %v1966_v2 = vpop.permute.xlu1 %811 }
 0x31a   :  { %885 = vperm.xlu0 %1266, %v1824_v49   ;;  %895 = vperm.xlu1 %1267, %v1824_v49  }
 0x31b   :  { %654 = vrot.lane.b32.xlu2 %v1897_v26, %s1452_s2 }
 0x31e   :  { %v1971_v59 = vpop.permute.xlu1 %831 }
 0x322   :  { %1269 = vset.pattern.permute.xlu0 %v2173_v43  ;;  %1270 = vset.pattern.permute.xlu1 %v2174_v28 }
 0x323   :  { %702 = vrot.lane.b32.xlu2 %v1897_v26, %s1444_s30  ;;  %915 = vperm.xlu0 %1269, %v1824_v49   ;;  %s1495_s30 = smov [#allocation12]  }
 0x324   :  { %931 = vperm.xlu1 %1270, %v1824_v49   ;;  %s1140_s7 = sshll.u32 %s1495_s30, 4  ;;  %s1141_s7 = int_to_ptr.vmem [resolvable:$true] %s1140_s7 }
 0x327   :  { %v1987_v29 = vpop.permute.xlu1 %859 }
 0x32b   :  { %746 = vrot.lane.b32.xlu2 %v1895_v60, %s1456_s4  ;;  %970 = vrot.lane.b32.xlu0 %v1897_v26, %s1482_s24 }
 0x32c   :  { %1272 = vset.pattern.permute.xlu1 %v2175_v27  ;;  %1275 = vset.pattern.permute.xlu0 %v2176_v45 }
 0x32d   :  { %951 = vperm.xlu1 %1272, %v1824_v49  }
 0x333   :  { %905 = vperm.xlu2 %1268, %v1824_v49   ;;  %987 = vperm.xlu0 %1275, %v1824_v49  }
 0x335   :  { %794 = vrot.lane.b32.xlu1 %v1897_v26, %s1463_s21 }
 0x336   :  { %1273 = vset.pattern.permute.xlu1 %v2177_v30 }
 0x33b   :  { %1271 = vset.pattern.permute.xlu2 %v2178_v42  ;;  %1278 = vset.pattern.permute.xlu0 %v2179_v36 }
 0x33c   :  { %941 = vperm.xlu2 %1271, %v1824_v49   ;;  %1023 = vperm.xlu0 %1278, %v1824_v49  }
 0x33d   :  { %961 = vperm.xlu1 %1273, %v1824_v49  }
 0x344   :  { %792 = vrot.lane.b32.xlu2 %v1895_v60, %s1463_s21  ;;  %1283 = vset.pattern.permute.xlu0 %v2180_v5 }
 0x345   :  { %878 = vrot.lane.b32.xlu1 %v1897_v26, %s1474_s23  ;;  %1274 = vset.pattern.permute.xlu2 %v2181_v1 }
 0x346   :  { %1276 = vset.pattern.permute.xlu1 %v2182_v4 }
 0x34c   :  { %977 = vperm.xlu2 %1274, %v1824_v49  }
 0x34d   :  { %922 = vrot.lane.b32.xlu1 %v1895_v60, %s1470_s22 }
 0x354   :  { %876 = vrot.lane.b32.xlu2 %v1895_v60, %s1474_s23 }
 0x355   :  { %997 = vperm.xlu1 %1276, %v1824_v49   ;;  %1277 = vset.pattern.permute.xlu2 %v2183_v48 }
 0x35c   :  { %924 = vrot.lane.b32.xlu2 %v1897_v26, %s1470_s22 }
 0x35d   :  { %1016 = vrot.lane.b32.xlu1 %v1897_v26, %s1487_s25 }
 0x35e   :  { %1279 = vset.pattern.permute.xlu1 %v2184_v41 }
 0x364   :  { %968 = vrot.lane.b32.xlu2 %v1895_v60, %s1482_s24 }
 0x365   :  { %1033 = vperm.xlu1 %1279, %v1824_v49  }
 0x36c   :  { %1007 = vperm.xlu2 %1277, %v1824_v49  }
 0x36d   :  { %1281 = vset.pattern.permute.xlu1 %v2185_v9  ;;  %v653_v0 = vpop.permute.xlu2 %652 }
 0x36e   :  { %1053 = vperm.xlu1 %1281, %v1824_v49  }
 0x374   :  { %1014 = vrot.lane.b32.xlu2 %v1895_v60, %s1487_s25 }
 0x375   :  { %v655_v32 = vpop.permute.xlu2 %654  ;;  %1280 = vset.pattern.permute.xlu2 %v2186_v40 }
 0x376   :  { %v656_v12 = vsel %vm104_vm0, %v653_v0, %v655_v32  ;;  %v657_v13 = vsel %vm104_vm0, %v655_v32, %v653_v0  ;;  %1282 = vset.pattern.permute.xlu1 %v1454_v7  ;;  %v2190_v0 = vperm.slane %v1662_v50, 1 }
 0x377   :  { %v658_v23 = vmul.f32 %v657_v13, %v2187_v19  ;;  %v659_v25 = vmul.f32 %v656_v12, %v2188_v22 }
 0x379   :  { %v670_v51 = vrot.slane %v658_v23, 2  ;;  %v671_v63 = vrot.slane %v659_v25, 2  ;;  %v666_v7 = vmul.f32 %v1866_v6, %v658_v23  ;;  %v667_v27 = vmul.f32 %v1866_v6, %v659_v25 }
 0x37a   :  { %v680_v45 = vrot.slane %v658_v23, 4  ;;  %v681_v38 = vrot.slane %v659_v25, 4  ;;  %v690_v5 = vrot.slane %v658_v23, 6  ;;  %v691_v1 = vrot.slane %v659_v25, 6  ;;  %v2008_v23 = vpop.permute.xlu0 %849 }
 0x37b   :  { %v676_v43 = vmul.f32 %v1878_v14, %v670_v51  ;;  %v677_v28 = vmul.f32 %v1878_v14, %v671_v63  ;;  %v2189_v6 = vperm.slane %v1662_v50, 0 }
 0x37c   :  { %1043 = vperm.xlu2 %1280, %v1824_v49   ;;  %v686_v14 = vmul.f32 %v1868_v10, %v680_v45  ;;  %v687_v41 = vmul.f32 %v1868_v10, %v681_v38  ;;  %v696_v13 = vmul.f32 %v1886_v16, %v690_v5  ;;  %v697_v19 = vmul.f32 %v1886_v16, %v691_v1 }
 0x37d   :  { %v703_v39 = vpop.permute.xlu2 %702  ;;  %v678_v30 = vadd.f32 %v676_v43, %v666_v7  ;;  %v679_v42 = vadd.f32 %v677_v28, %v667_v27 }
 0x37f   :  { %v688_v40 = vadd.f32 %v686_v14, %v678_v30  ;;  %v689_v12 = vadd.f32 %v687_v41, %v679_v42 }
 0x381   :  { %v698_v63 = vadd.f32 %v696_v13, %v688_v40 }
 0x384   :  { %v701_v36 = vpop.permute.xlu1 %700 }
 0x385   :  { %v704_v49 = vsel %vm159_vm1, %v701_v36, %v703_v39  ;;  %v705_v4 = vsel %vm159_vm1, %v703_v39, %v701_v36  ;;  %v747_v48 = vpop.permute.xlu2 %746  ;;  %v699_v39 = vadd.f32 %v697_v19, %v689_v12  ;;  %v749_v36 = vpop.permute.xlu0 %748 }
 0x386   :  { %v706_v9 = vmul.f32 %v705_v4, %v2189_v6  ;;  %v707_v32 = vmul.f32 %v704_v49, %v2190_v0  ;;  %v750_v4 = vsel %vm213_vm2, %v747_v48, %v749_v36  ;;  %v751_v14 = vsel %vm213_vm2, %v749_v36, %v747_v48 }
 0x388   :  { %v712_v22 = vmul.f32 %v1880_v15, %v706_v9  ;;  %v713_v25 = vmul.f32 %v1880_v15, %v707_v32  ;;  %v716_v51 = vrot.slane %v706_v9, 2  ;;  %v717_v10 = vrot.slane %v707_v32, 2 }
 0x389   :  { %v726_v45 = vrot.slane %v706_v9, 4  ;;  %v727_v38 = vrot.slane %v707_v32, 4  ;;  %v736_v1 = vrot.slane %v706_v9, 6  ;;  %v737_v49 = vrot.slane %v707_v32, 6 }
 0x38a   :  { %v714_v28 = vadd.f32 %v712_v22, %v698_v63  ;;  %v715_v7 = vadd.f32 %v713_v25, %v699_v39  ;;  %v722_v27 = vmul.f32 %v1922_v58, %v716_v51  ;;  %v723_v16 = vmul.f32 %v1922_v58, %v717_v10 }
 0x38b   :  { %v732_v15 = vmul.f32 %v1882_v17, %v726_v45  ;;  %v733_v5 = vmul.f32 %v1882_v17, %v727_v38  ;;  %v742_v40 = vmul.f32 %v1884_v18, %v736_v1  ;;  %v743_v12 = vmul.f32 %v1884_v18, %v737_v49 }
 0x38c   :  { %v2012_v43 = vpop.permute.xlu1 %895  ;;  %v724_v30 = vadd.f32 %v722_v27, %v714_v28  ;;  %v725_v42 = vadd.f32 %v723_v16, %v715_v7  ;;  %v2191_v17 = vperm.slane %v1693_v56, 0  ;;  %v2192_v32 = vperm.slane %v1693_v56, 1 }
 0x38d   :  { %v2014_v50 = vpop.permute.xlu2 %905 }
 0x38e   :  { %v734_v41 = vadd.f32 %v732_v15, %v724_v30  ;;  %v735_v6 = vadd.f32 %v733_v5, %v725_v42  ;;  %v752_v9 = vmul.f32 %v751_v14, %v2191_v17  ;;  %v753_v13 = vmul.f32 %v750_v4, %v2192_v32 }
 0x390   :  { %v744_v19 = vadd.f32 %v742_v40, %v734_v41  ;;  %v745_v22 = vadd.f32 %v743_v12, %v735_v6  ;;  %v758_v48 = vmul.f32 %v1933_v52, %v752_v9  ;;  %v759_v25 = vmul.f32 %v1933_v52, %v753_v13 }
 0x391   :  { %v762_v51 = vrot.slane %v752_v9, 2  ;;  %v763_v10 = vrot.slane %v753_v13, 2  ;;  %v772_v16 = vrot.slane %v752_v9, 4  ;;  %v773_v56 = vrot.slane %v753_v13, 4 }
 0x392   :  { %v760_v63 = vadd.f32 %v758_v48, %v744_v19  ;;  %v761_v39 = vadd.f32 %v759_v25, %v745_v22  ;;  %v782_v52 = vrot.slane %v752_v9, 6  ;;  %v783_v36 = vrot.slane %v753_v13, 6 }
 0x393   :  { %v768_v18 = vmul.f32 %v1976_v11, %v762_v51  ;;  %v769_v27 = vmul.f32 %v1976_v11, %v763_v10  ;;  %v778_v30 = vmul.f32 %v1888_v20, %v772_v16  ;;  %v779_v42 = vmul.f32 %v1888_v20, %v773_v56 }
 0x394   :  { %v788_v4 = vmul.f32 %v1943_v57, %v782_v52  ;;  %v789_v14 = vmul.f32 %v1943_v57, %v783_v36  ;;  %v2193_v6 = vperm.slane %v1719_v46, 0  ;;  %v2194_v40 = vperm.slane %v1719_v46, 1  ;;  %v886_v46 = vpop.permute.xlu0 %885 }
 0x395   :  { %v770_v45 = vadd.f32 %v768_v18, %v760_v63  ;;  %v771_v38 = vadd.f32 %v769_v27, %v761_v39 }
 0x396   :  { %v2024_v58 = vpop.permute.xlu1 %931  ;;  %v2026_v0 = vpop.permute.xlu2 %941 }
 0x397   :  { %v780_v15 = vadd.f32 %v778_v30, %v770_v45  ;;  %v781_v5 = vadd.f32 %v779_v42, %v771_v38  ;;  %v846_v38 = vrot.slane %v1895_v60, 2  ;;  %v847_v30 = vrot.slane %v1897_v26, 2 }
 0x399   :  { %v790_v17 = vadd.f32 %v788_v4, %v780_v15  ;;  %v791_v9 = vadd.f32 %v789_v14, %v781_v5  ;;  %v843_v15 = vmul.f32 %v1954_v31, %v1897_v26  ;;  %v866_v4 = vrot.slane %v1895_v60, 6 }
 0x39a   :  { %v867_v14 = vrot.slane %v1897_v26, 6 }
 0x39e   :  { %v793_v28 = vpop.permute.xlu2 %792 }
 0x39f   :  { %v2036_v7 = vpop.permute.xlu1 %951 }
 0x3a6   :  { %v2042_v1 = vpop.permute.xlu2 %977 }
 0x3a7   :  { %v795_v49 = vpop.permute.xlu1 %794 }
 0x3a8   :  { %v796_v11 = vsel %vm267_vm3, %v793_v28, %v795_v49  ;;  %v797_v41 = vsel %vm267_vm3, %v795_v49, %v793_v28 }
 0x3a9   :  { %v798_v20 = vmul.f32 %v797_v41, %v2193_v6  ;;  %v799_v12 = vmul.f32 %v796_v11, %v2194_v40  ;;  %v856_v11 = vrot.slane %v1895_v60, 4  ;;  %v857_v41 = vrot.slane %v1897_v26, 4 }
 0x3aa   :  { %v852_v6 = vmul.f32 %v2008_v23, %v846_v38 }
 0x3ab   :  { %v804_v32 = vmul.f32 %v1990_v3, %v798_v20  ;;  %v805_v13 = vmul.f32 %v1990_v3, %v799_v12  ;;  %v808_v19 = vrot.slane %v798_v20, 2  ;;  %v809_v57 = vrot.slane %v799_v12, 2 }
 0x3ac   :  { %v818_v22 = vrot.slane %v798_v20, 4  ;;  %v819_v48 = vrot.slane %v799_v12, 4  ;;  %v828_v25 = vrot.slane %v798_v20, 6  ;;  %v829_v51 = vrot.slane %v799_v12, 6 }
 0x3ad   :  { %v806_v10 = vadd.f32 %v804_v32, %v790_v17  ;;  %v807_v63 = vadd.f32 %v805_v13, %v791_v9  ;;  %v814_v39 = vmul.f32 %v1966_v2, %v808_v19  ;;  %v815_v28 = vmul.f32 %v1966_v2, %v809_v57  ;;  %v916_v57 = vpop.permute.xlu0 %915 }
 0x3ae   :  { %v877_v18 = vpop.permute.xlu2 %876  ;;  %v824_v56 = vmul.f32 %v1948_v34, %v818_v22  ;;  %v825_v3 = vmul.f32 %v1948_v34, %v819_v48  ;;  %v834_v36 = vmul.f32 %v1971_v59, %v828_v25  ;;  %v835_v2 = vmul.f32 %v1971_v59, %v829_v51 }
 0x3af   :  { %v816_v27 = vadd.f32 %v814_v39, %v806_v10  ;;  %v817_v16 = vadd.f32 %v815_v28, %v807_v63  ;;  %v2060_v45 = vpop.permute.xlu1 %961  ;;  %v842_v34 = vmul.f32 %v1954_v31, %v1895_v60  ;;  %v853_v59 = vmul.f32 %v2008_v23, %v847_v30 }
 0x3b0   :  { %v862_v17 = vmul.f32 %v1987_v29, %v856_v11  ;;  %v863_v9 = vmul.f32 %v1987_v29, %v857_v41  ;;  %v872_v19 = vmul.f32 %v1963_v53, %v866_v4  ;;  %v873_v60 = vmul.f32 %v1963_v53, %v867_v14 }
 0x3b1   :  { %v826_v42 = vadd.f32 %v824_v56, %v816_v27  ;;  %v827_v52 = vadd.f32 %v825_v3, %v817_v16  ;;  %v2195_v11 = vperm.slane %v1761_v55, 1 }
 0x3b3   :  { %v836_v5 = vadd.f32 %v834_v36, %v826_v42  ;;  %v837_v49 = vadd.f32 %v835_v2, %v827_v52 }
 0x3b5   :  { %v844_v20 = vadd.f32 %v842_v34, %v836_v5  ;;  %v845_v40 = vadd.f32 %v843_v15, %v837_v49  ;;  %v971_v34 = vpop.permute.xlu0 %970 }
 0x3b6   :  { %v925_v12 = vpop.permute.xlu2 %924 }
 0x3b7   :  { %v879_v31 = vpop.permute.xlu1 %878  ;;  %v854_v32 = vadd.f32 %v852_v6, %v844_v20  ;;  %v855_v13 = vadd.f32 %v853_v59, %v845_v40 }
 0x3b8   :  { %v880_v26 = vsel %vm359_vm4, %v877_v18, %v879_v31  ;;  %v881_v23 = vsel %vm359_vm4, %v879_v31, %v877_v18 }
 0x3b9   :  { %v864_v22 = vadd.f32 %v862_v17, %v854_v32  ;;  %v865_v48 = vadd.f32 %v863_v9, %v855_v13  ;;  %v882_v25 = vmul.f32 %v880_v26, %v365_v61  ;;  %v883_v29 = vmul.f32 %v881_v23, %v366_v44 }
 0x3bb   :  { %v874_v51 = vadd.f32 %v872_v19, %v864_v22  ;;  %v875_v10 = vadd.f32 %v873_v60, %v865_v48  ;;  %v888_v63 = vmul.f32 %v886_v46, %v882_v25  ;;  %v889_v39 = vmul.f32 %v886_v46, %v883_v29 }
 0x3bc   :  { %v892_v53 = vrot.slane %v882_v25, 2  ;;  %v893_v28 = vrot.slane %v883_v29, 2  ;;  %v902_v27 = vrot.slane %v882_v25, 4  ;;  %v903_v16 = vrot.slane %v883_v29, 4 }
 0x3bd   :  { %v890_v56 = vadd.f32 %v888_v63, %v874_v51  ;;  %v891_v3 = vadd.f32 %v889_v39, %v875_v10  ;;  %v912_v38 = vrot.slane %v882_v25, 6  ;;  %v913_v18 = vrot.slane %v883_v29, 6 }
 0x3be   :  { %v898_v30 = vmul.f32 %v2012_v43, %v892_v53  ;;  %v899_v42 = vmul.f32 %v2012_v43, %v893_v28  ;;  %v969_v61 = vpop.permute.xlu2 %968  ;;  %v908_v36 = vmul.f32 %v2014_v50, %v902_v27  ;;  %v909_v46 = vmul.f32 %v2014_v50, %v903_v16  ;;  %v988_v53 = vpop.permute.xlu0 %987 }
 0x3bf   :  { %v923_v52 = vpop.permute.xlu1 %922  ;;  %v918_v2 = vmul.f32 %v916_v57, %v912_v38  ;;  %v919_v15 = vmul.f32 %v916_v57, %v913_v18  ;;  %v972_v50 = vsel %vm467_vm6, %v969_v61, %v971_v34  ;;  %v973_v6 = vsel %vm467_vm6, %v971_v34, %v969_v61 }
 0x3c0   :  { %v900_v62 = vadd.f32 %v898_v30, %v890_v56  ;;  %v901_v44 = vadd.f32 %v899_v42, %v891_v3  ;;  %v926_v5 = vsel %vm413_vm5, %v923_v52, %v925_v12  ;;  %v927_v49 = vsel %vm413_vm5, %v925_v12, %v923_v52 }
 0x3c1   :  { %v928_v43 = vmul.f32 %v926_v5, %v419_v21  ;;  %v929_v41 = vmul.f32 %v927_v49, %v2195_v11  ;;  %v974_v55 = vmul.f32 %v972_v50, %v473_v24  ;;  %v975_v21 = vmul.f32 %v973_v6, %v474_v33 }
 0x3c2   :  { %v910_v4 = vadd.f32 %v908_v36, %v900_v62  ;;  %v911_v14 = vadd.f32 %v909_v46, %v901_v44 }
 0x3c3   :  { %v934_v40 = vmul.f32 %v2024_v58, %v928_v43  ;;  %v935_v12 = vmul.f32 %v2024_v58, %v929_v41  ;;  %v938_v17 = vrot.slane %v928_v43, 2  ;;  %v939_v9 = vrot.slane %v929_v41, 2 }
 0x3c4   :  { %v920_v59 = vadd.f32 %v918_v2, %v910_v4  ;;  %v921_v20 = vadd.f32 %v919_v15, %v911_v14  ;;  %v948_v31 = vrot.slane %v928_v43, 4  ;;  %v949_v32 = vrot.slane %v929_v41, 4 }
 0x3c5   :  { %v944_v57 = vmul.f32 %v2026_v0, %v938_v17  ;;  %v945_v26 = vmul.f32 %v2026_v0, %v939_v9  ;;  %v958_v23 = vrot.slane %v928_v43, 6  ;;  %v959_v22 = vrot.slane %v929_v41, 6 }
 0x3c6   :  { %v936_v13 = vadd.f32 %v934_v40, %v920_v59  ;;  %v937_v19 = vadd.f32 %v935_v12, %v921_v20  ;;  %v1008_v60 = vpop.permute.xlu2 %1007  ;;  %v954_v29 = vmul.f32 %v2036_v7, %v948_v31  ;;  %v955_v51 = vmul.f32 %v2036_v7, %v949_v32  ;;  %v1024_v14 = vpop.permute.xlu0 %1023 }
 0x3c7   :  { %v998_v58 = vpop.permute.xlu1 %997  ;;  %v984_v24 = vrot.slane %v974_v55, 2  ;;  %v985_v10 = vrot.slane %v975_v21, 2  ;;  %v964_v63 = vmul.f32 %v2060_v45, %v958_v23  ;;  %v965_v39 = vmul.f32 %v2060_v45, %v959_v22 }
 0x3c8   :  { %v946_v48 = vadd.f32 %v944_v57, %v936_v13  ;;  %v947_v25 = vadd.f32 %v945_v26, %v937_v19  ;;  %v980_v27 = vmul.f32 %v2042_v1, %v974_v55  ;;  %v981_v16 = vmul.f32 %v2042_v1, %v975_v21 }
 0x3c9   :  { %v990_v56 = vmul.f32 %v988_v53, %v984_v24  ;;  %v991_v3 = vmul.f32 %v988_v53, %v985_v10  ;;  %v994_v30 = vrot.slane %v974_v55, 4  ;;  %v995_v42 = vrot.slane %v975_v21, 4 }
 0x3ca   :  { %v956_v8 = vadd.f32 %v954_v29, %v946_v48  ;;  %v957_v33 = vadd.f32 %v955_v51, %v947_v25  ;;  %v2196_v2 = vperm.slane %v1794_v54, 1  ;;  %v1004_v5 = vrot.slane %v974_v55, 6 }
 0x3cb   :  { %v1000_v36 = vmul.f32 %v998_v58, %v994_v30  ;;  %v1001_v46 = vmul.f32 %v998_v58, %v995_v42  ;;  %v1005_v49 = vrot.slane %v975_v21, 6 }
 0x3cc   :  { %v966_v28 = vadd.f32 %v964_v63, %v956_v8  ;;  %v967_v0 = vadd.f32 %v965_v39, %v957_v33  ;;  %v1010_v43 = vmul.f32 %v1008_v60, %v1004_v5 }
 0x3cd   :  { %v1011_v11 = vmul.f32 %v1008_v60, %v1005_v49 }
 0x3ce   :  { %v1015_v38 = vpop.permute.xlu2 %1014  ;;  %v982_v18 = vadd.f32 %v980_v27, %v966_v28  ;;  %v983_v7 = vadd.f32 %v981_v16, %v967_v0 }
 0x3cf   :  { %v1017_v61 = vpop.permute.xlu1 %1016 }
 0x3d0   :  { %v1018_v52 = vsel %vm521_vm7, %v1015_v38, %v1017_v61  ;;  %v1019_v45 = vsel %vm521_vm7, %v1017_v61, %v1015_v38  ;;  %v992_v62 = vadd.f32 %v990_v56, %v982_v18  ;;  %v993_v44 = vadd.f32 %v991_v3, %v983_v7 }
 0x3d1   :  { %v1020_v1 = vmul.f32 %v1018_v52, %v527_v47  ;;  %v1021_v15 = vmul.f32 %v1019_v45, %v2196_v2 }
 0x3d2   :  { %v1002_v34 = vadd.f32 %v1000_v36, %v992_v62  ;;  %v1003_v4 = vadd.f32 %v1001_v46, %v993_v44 }
 0x3d3   :  { %v1026_v41 = vmul.f32 %v1024_v14, %v1020_v1  ;;  %v1027_v37 = vmul.f32 %v1024_v14, %v1021_v15  ;;  %v1030_v20 = vrot.slane %v1020_v1, 2  ;;  %v1031_v40 = vrot.slane %v1021_v15, 2 }
 0x3d4   :  { %v1012_v50 = vadd.f32 %v1010_v43, %v1002_v34  ;;  %v1013_v6 = vadd.f32 %v1011_v11, %v1003_v4  ;;  %v1040_v31 = vrot.slane %v1020_v1, 4  ;;  %v1041_v32 = vrot.slane %v1021_v15, 4 }
 0x3d5   :  { %v1050_v57 = vrot.slane %v1020_v1, 6  ;;  %v1051_v60 = vrot.slane %v1021_v15, 6 }
 0x3d6   :  { %v1028_v47 = vadd.f32 %v1026_v41, %v1012_v50  ;;  %v1029_v9 = vadd.f32 %v1027_v37, %v1013_v6  ;;  %v1044_v54 = vpop.permute.xlu2 %1043 }
 0x3d7   :  { %v1034_v59 = vpop.permute.xlu1 %1033  ;;  %v1046_v13 = vmul.f32 %v1044_v54, %v1040_v31  ;;  %v1047_v19 = vmul.f32 %v1044_v54, %v1041_v32 }
 0x3d8   :  { %v1036_v12 = vmul.f32 %v1034_v59, %v1030_v20  ;;  %v1037_v17 = vmul.f32 %v1034_v59, %v1031_v40  ;;  %v1288_v20 = vld [vmem:[#allocation3] sm:$0xff] }
 0x3da   :  { %v1038_v55 = vadd.f32 %v1036_v12, %v1028_v47  ;;  %v1039_v21 = vadd.f32 %v1037_v17, %v1029_v9  ;;  %v1289_v12 = vld [vmem:[#allocation3 + $0x8] sm:$0xff] }
 0x3dc   :  { %v1048_v23 = vadd.f32 %v1046_v13, %v1038_v55  ;;  %v1049_v22 = vadd.f32 %v1047_v19, %v1039_v21 }
 0x3e0   :  { %v1054_v26 = vpop.permute.xlu1 %1053 }
 0x3e1   :  { %v1056_v58 = vmul.f32 %v1054_v26, %v1050_v57  ;;  %v1057_v48 = vmul.f32 %v1054_v26, %v1051_v60 }
 0x3e3   :  { %v1058_v25 = vadd.f32 %v1056_v58, %v1048_v23  ;;  %v1059_v29 = vadd.f32 %v1057_v48, %v1049_v22 }
 0x3e5   :  { %v1060_v51 = vadd.f32 %v1059_v29, %v1058_v25  ;;  %v1063_v24 = vmul.f32 %v1058_v25, %v1058_v25  ;;  %v1064_v10 = vmul.f32 %v1059_v29, %v1059_v29 }
 0x3e7   :  { %1061 = vadd.xlane.f32.xlu2 %v1060_v51  ;;  %v1065_v8 = vadd.f32 %v1064_v10, %v1063_v24 }
 0x3e9   :  { %1066 = vadd.xlane.f32.xlu0 %v1065_v8 }
 0x45a   :  { %v1062_v33 = vpop.xlane.xlu2 %1061 }
 0x45b   :  { %v1068_v63 = vrot.slane %v1062_v33, 1  ;;  %v1069_v39 = vrot.slane %v1062_v33, 7 }
 0x45c   :  { %v1067_v53 = vpop.xlane.xlu0 %1066 }
 0x45d   :  { %1071 = vrot.lane.b32.xlu1 %v1068_v63, %s1492_s26  ;;  %v1081_v28 = vrot.slane %v1067_v53, 1  ;;  %v1082_v0 = vrot.slane %v1067_v53, 7 }
 0x465   :  { %1075 = vrot.lane.b32.xlu1 %v1069_v39, %s1492_s26 }
 0x46d   :  { %1084 = vrot.lane.b32.xlu1 %v1081_v28, %s1492_s26 }
 0x475   :  { %1088 = vrot.lane.b32.xlu1 %v1082_v0, %s1492_s26 }
 0x47d   :  { %1107 = vrot.lane.b32.xlu1 %v1820_v35, %s1494_s5 }
 0x4cf   :  { %v1072_v27 = vpop.permute.xlu1 %1071 }
 0x4d7   :  { %v1076_v16 = vpop.permute.xlu1 %1075 }
 0x4d8   :  { %v1078_v3 = vsel %vm581_vm8, %v1072_v27, %v1076_v16 }
 0x4d9   :  { %v1079_v38 = vadd.f32 %v1078_v3, %v1062_v33 }
 0x4db   :  { %v1080_v18 = vmul.f32 0.001953125, %v1079_v38 }
 0x4dd   :  { %v1094_v61 = vmul.f32 %v1080_v18, %v1080_v18 }
 0x4df   :  { %v1085_v56 = vpop.permute.xlu1 %1084 }
 0x4e7   :  { %v1089_v7 = vpop.permute.xlu1 %1088 }
 0x4e8   :  { %v1091_v30 = vsel %vm581_vm8, %v1085_v56, %v1089_v7 }
 0x4e9   :  { %v1092_v42 = vadd.f32 %v1091_v30, %v1067_v53 }
 0x4eb   :  { %v1093_v52 = vmul.f32 0.001953125, %v1092_v42 }
 0x4ed   :  { %v1095_v45 = vsub.f32 %v1093_v52, %v1094_v61 }
 0x4ef   :  { %v1096_v62 = vadd.f32 1e-05, %v1095_v45  ;;  %v1108_v5 = vpop.permute.xlu1 %1107 }
 0x4f1   :  { %1286 = vrsqrt.f32 %v1096_v62  ;;  %vm1103_vm15 = vweird.f32 %v1096_v62 }
 0x4f7   :  { %v1287_v44 = vpop.eup %1286 }
 0x4f8   :  { %v1098_v36 = vmul.f32 %v1287_v44, %v1096_v62  ;;  %vm1104_vm14 = vweird.f32 %v1287_v44 }
 0x4f9   :  { %vm1105_vm0 = vmor %vm1103_vm15, %vm1104_vm14 }
 0x4fa   :  { %v1099_v46 = vmul.f32 %v1287_v44, %v1098_v36 }
 0x4fc   :  { %v1100_v1 = vmul.f32 0.5, %v1099_v46 }
 0x4fe   :  { %v1101_v2 = vsub.f32 1.5, %v1100_v1 }
 0x500   :  { %v1102_v15 = vmul.f32 %v1287_v44, %v1101_v2 }
 0x502   :  { %v1106_v49 = vsel %vm1105_vm0, %v1287_v44, %v1102_v15 }
 0x503   :  { %v1110_v34 = vmul.f32 %v1108_v5, %v1106_v49 }
 0x505   :  { %v1118_v4 = vmul.f32 %v1110_v34, %v1080_v18  ;;  %1113 = vperm.xlu1 %1282, %v1110_v34  }
 0x507   :  { %1120 = vrot.lane.b32.xlu2 %v1118_v4, %s1474_s23 }
 0x561   :  { %v1121_v14 = vpop.permute.xlu2 %1120 }
 0x562   :  { %v1123_v43 = vsub.f32 %v1820_v35, %v1121_v14 }
 0x564   :  { %1126 = vperm.xlu0 %1283, %v1123_v43  }
 0x577   :  { %v1114_v11 = vpop.permute.xlu1 %1113 }
 0x578   :  { %v1116_v41 = vmul.f32 %v1114_v11, %v1058_v25  ;;  %v1117_v37 = vmul.f32 %v1114_v11, %v1059_v29 }
 0x5d6   :  { %v1127_v50 = vpop.permute.xlu0 %1126 }
 0x5d7   :  { %v1129_v6 = vadd.f32 %v1127_v50, %v1116_v41  ;;  %v1130_v59 = vadd.f32 %v1127_v50, %v1117_v37 }
 0x5d9   :  { %v1131_v40 = vadd.f32 %v1288_v20, %v1129_v6  ;;  %v1132_v17 = vadd.f32 %v1289_v12, %v1130_v59 }
 0x5db   :  { %1133 = vst [vmem:[#allocation12] sm:$0xff] %v1131_v40 }
 0x5dc   :  { %1134 = vst [vmem:[#allocation12 + $0x8] sm:$0xff] %v1132_v17 }
 0x5dd   :  { %1145 = dma.vmem_to_hbm [thread:$0]  %s1141_s7, 256, %s1143_s10, [#allocation5]  }
 0x5de   :  { %1440 = dma.done.wait [#allocation5], 256  }
 0x5df   :  { %1441 = vsyncadd [#allocation5], 4294967040 }
 0x5e0   :  { %1150 = vsyncpa [#allocation4], 1 }
 0x5e1   :  { %1151 = vsyncpa [#allocation7], 1 }
 0x5e2   :  { %1152 = vsyncpa [#allocation10], 1 }
 0x5e3   :  { %1153 = vsyncpa [#allocation5], 1 }

</bundles_post_ra>
